<compile_context>
chip_gen: v5e
topology: v5e:2x2
jax: 0.10.0
libtpu: 0.0.40
codegen_flags: <defaults>
</compile_context>

<pallas_src>
import math
import functools

import numpy as np
import jax
import jax.numpy as jnp
from jax.experimental import pallas as pl
from jax.experimental.pallas import tpu as pltpu

# ----------------------------- model config (small) -------------------------
BATCH = 2
IN_CHANS = 3
IMG_SIZE = 32                        # 224 in the real model
PATCH = 16                           # same patch size as vit_base_patch16_224
N_PATCH = (IMG_SIZE // PATCH) ** 2   # 4
SEQ = N_PATCH + 1                    # 5 real tokens (CLS + patches)
SEQ_PAD = 8                          # padded to a sublane multiple
EMBED_DIM = 128                      # 768 in the real model (lane-dense: 128)
DEPTH = 2                            # 12 in the real model
NUM_HEADS = 4                        # 12 in the real model
HEAD_DIM = EMBED_DIM // NUM_HEADS    # 32
MLP_HIDDEN = 4 * EMBED_DIM           # 512
NUM_CLASSES = 10
NUM_CLASSES_PAD = 128                # head output padded to full lane width
LN_EPS = 1e-6                        # timm ViT uses LayerNorm(eps=1e-6)
PATCH_DIM = IN_CHANS * PATCH * PATCH          # 768
ROWS = BATCH * SEQ_PAD                         # 16: full activation slab rows
STACK = BATCH * NUM_HEADS * SEQ_PAD            # 64: (batch, head, seq) stacked rows

F32 = jnp.float32
BF16 = jnp.bfloat16


# ------------------------------ in-kernel helpers ----------------------------
def _layernorm(x, g, b, eps):
    # f32 LayerNorm over the last (lane) axis.
    mean = jnp.mean(x, axis=-1, keepdims=True)
    var = jnp.mean(jnp.square(x - mean), axis=-1, keepdims=True)
    return (x - mean) * jax.lax.rsqrt(var + eps) * g + b


# ------------------------------ the fused kernel -----------------------------
def _vit_kernel(patches_ref, pw_ref, pb_ref, cls_ref, post_ref, bias_ref,
                ln1g_ref, ln1b_ref, qkvw_ref, qkvb_ref, projw_ref, projb_ref,
                ln2g_ref, ln2b_ref, fc1w_ref, fc1b_ref, fc2w_ref, fc2b_ref,
                lnfg_ref, lnfb_ref, headw_ref, headb_ref,
                o_ref, h_ref, *, eps):
    l = pl.program_id(0)

    # ---- patch embed + CLS + pos embed (first grid step only), one full store.
    @pl.when(l == 0)
    def _():
        tok = (jnp.dot(patches_ref[...], pw_ref[...],
                       preferred_element_type=F32)
               + pb_ref[...])                                  # (B*N_PATCH, D)
        cls_row = cls_ref[...]                                 # (1, D) cls + pos[0]
        pos_tok = post_ref[...]                                # (N_PATCH, D)
        pad_rows = jnp.zeros((SEQ_PAD - SEQ, EMBED_DIM), F32)
        rows = []
        for b in range(BATCH):
            rows.append(cls_row)
            rows.append(tok[b * N_PATCH:(b + 1) * N_PATCH, :] + pos_tok)
            rows.append(pad_rows)
        h_ref[...] = jnp.concatenate(rows, axis=0)             # (ROWS, D)

    # ---- transformer layer l : LN1 -> QKV -> block-diag attn -> proj -> +res
    h = h_ref[...]                                             # (ROWS, D) f32
    y = _layernorm(h, ln1g_ref[0], ln1b_ref[0], eps)
    qkv = (jnp.dot(y.astype(BF16), qkvw_ref[0],
                   preferred_element_type=F32)
           + qkvb_ref[0])                                      # (ROWS, 3D); Q pre-scaled

    def stack_heads(off):
        # (batch, head) blocks stacked along sublanes -> (STACK, HEAD_DIM).
        parts = []
        for b in range(BATCH):
            r0 = b * SEQ_PAD
            for hh in range(NUM_HEADS):
                c0 = off + hh * HEAD_DIM
                parts.append(qkv[r0:r0 + SEQ_PAD, c0:c0 + HEAD_DIM])
        return jnp.concatenate(parts, axis=0).astype(BF16)

    q_s = stack_heads(0)
    k_s = stack_heads(EMBED_DIM)
    v_s = stack_heads(2 * EMBED_DIM)

    # One score matmul; additive bias keeps only the per-(batch,head) diagonal
    # blocks and masks padded key positions.  One softmax pass over (64,64).
    s = jax.lax.dot_general(q_s, k_s, (((1,), (1,)), ((), ())),
                            preferred_element_type=F32)        # (STACK, STACK)
    s = s + bias_ref[...]
    p = jnp.exp(s - jnp.max(s, axis=-1, keepdims=True))
    p = p * pl.reciprocal(jnp.sum(p, axis=-1, keepdims=True), approx=True)
    av_s = jnp.dot(p.astype(BF16), v_s,
                   preferred_element_type=F32)                 # (STACK, HEAD_DIM)

    # Un-stack heads back into a lane-dense (ROWS, D) tile.
    brows = []
    for b in range(BATCH):
        hcols = [av_s[(b * NUM_HEADS + hh) * SEQ_PAD:
                      (b * NUM_HEADS + hh + 1) * SEQ_PAD, :]
                 for hh in range(NUM_HEADS)]
        brows.append(jnp.concatenate(hcols, axis=1))           # (SEQ_PAD, D)
    av = jnp.concatenate(brows, axis=0)                        # (ROWS, D)

    # Single output-projection matmul + residual.
    h = h + projb_ref[0] + jnp.dot(av.astype(BF16), projw_ref[0],
                                   preferred_element_type=F32)

    # ---- MLP : LN2 -> fc1 -> GELU -> fc2 -> +residual
    y = _layernorm(h, ln2g_ref[0], ln2b_ref[0], eps)
    f = (jnp.dot(y.astype(BF16), fc1w_ref[0], preferred_element_type=F32)
         + fc1b_ref[0])
    # TODO(synk): timm uses exact erf-GELU; tanh approximation (~1e-3 activation
    # difference) kept for guaranteed Mosaic lowering.
    f = jax.nn.gelu(f, approximate=True)
    h = h + (jnp.dot(f.astype(BF16), fc2w_ref[0], preferred_element_type=F32)
             + fc2b_ref[0])
    h_ref[...] = h

    # ---- final LayerNorm + classifier head (last grid step only).
    @pl.when(l == DEPTH - 1)
    def _():
        cls = jnp.concatenate([h[b * SEQ_PAD:b * SEQ_PAD + 1, :]
                               for b in range(BATCH)], axis=0)  # (B, D)
        yf = _layernorm(cls, lnfg_ref[...], lnfb_ref[...], eps)
        o_ref[...] = (jnp.dot(yf.astype(BF16), headw_ref[...],
                              preferred_element_type=F32)
                      + headb_ref[...])                         # (B, NUM_CLASSES_PAD)


# --------------------------- pallas_call wrapper ------------------------------
def _lspec(shape):
    # Per-layer stacked weight: leading DEPTH axis indexed by the grid step.
    block = (1,) + tuple(shape[1:])
    return pl.BlockSpec(block, lambda l, _n=len(shape): (l,) + (0,) * (_n - 1))


def _cspec(shape):
    # Layer-invariant input: whole array as one block, same block every step.
    return pl.BlockSpec(tuple(shape), lambda l, _n=len(shape): (0,) * _n)


def vit_stack(patches, p):
    kernel = functools.partial(_vit_kernel, eps=LN_EPS)
    return pl.pallas_call(
        kernel,
        out_shape=jax.ShapeDtypeStruct((BATCH, NUM_CLASSES_PAD), F32),
        grid=(DEPTH,),
        in_specs=[
            _cspec((BATCH * N_PATCH, PATCH_DIM)),        # patches (bf16)
            _cspec((PATCH_DIM, EMBED_DIM)),              # patch_w (bf16)
            _cspec((1, EMBED_DIM)),                      # patch_b
            _cspec((1, EMBED_DIM)),                      # cls_row
            _cspec((N_PATCH, EMBED_DIM)),                # pos_tok
            _cspec((STACK, STACK)),                      # attn_bias
            _lspec((DEPTH, 1, EMBED_DIM)),               # ln1_g
            _lspec((DEPTH, 1, EMBED_DIM)),               # ln1_b
            _lspec((DEPTH, EMBED_DIM, 3 * EMBED_DIM)),   # qkv_w (bf16)
            _lspec((DEPTH, 1, 3 * EMBED_DIM)),           # qkv_b
            _lspec((DEPTH, EMBED_DIM, EMBED_DIM)),       # proj_w (bf16)
            _lspec((DEPTH, 1, EMBED_DIM)),               # proj_b
            _lspec((DEPTH, 1, EMBED_DIM)),               # ln2_g
            _lspec((DEPTH, 1, EMBED_DIM)),               # ln2_b
            _lspec((DEPTH, EMBED_DIM, MLP_HIDDEN)),      # fc1_w (bf16)
            _lspec((DEPTH, 1, MLP_HIDDEN)),              # fc1_b
            _lspec((DEPTH, MLP_HIDDEN, EMBED_DIM)),      # fc2_w (bf16)
            _lspec((DEPTH, 1, EMBED_DIM)),               # fc2_b
            _cspec((1, EMBED_DIM)),                      # lnf_g
            _cspec((1, EMBED_DIM)),                      # lnf_b
            _cspec((EMBED_DIM, NUM_CLASSES_PAD)),        # head_w (bf16)
            _cspec((1, NUM_CLASSES_PAD)),                # head_b
        ],
        out_specs=_cspec((BATCH, NUM_CLASSES_PAD)),
        scratch_shapes=[pltpu.VMEM((ROWS, EMBED_DIM), F32)],
        # Sequential layer carry through the VMEM scratch -> "arbitrary".
        # NOTE: at real vit_base sizes raise vmem_limit_bytes here (bf16 weights
        # double-buffered over the layer axis; tile fc1/fc2 along the hidden dim
        # on v7x's 64 MiB VMEM).
        compiler_params=pltpu.CompilerParams(
            dimension_semantics=("arbitrary",)),
    )(patches, p["patch_w"], p["patch_b"], p["cls_row"], p["pos_tok"],
      p["attn_bias"], p["ln1_g"], p["ln1_b"], p["qkv_w"], p["qkv_b"],
      p["proj_w"], p["proj_b"], p["ln2_g"], p["ln2_b"],
      p["fc1_w"], p["fc1_b"], p["fc2_w"], p["fc2_b"],
      p["lnf_g"], p["lnf_b"], p["head_w"], p["head_b"])


# ------------------------------ parameter init -------------------------------
def _make_attn_bias():
    # Additive mask for the (STACK, STACK) stacked-head score tile:
    # keep only the diagonal (batch, head) blocks and real (unpadded) keys.
    idx = np.arange(STACK)
    blk = idx // SEQ_PAD
    same_blk = blk[:, None] == blk[None, :]
    valid_key = (idx[None, :] % SEQ_PAD) < SEQ
    return jnp.asarray(np.where(same_blk & valid_key, 0.0, -1e30),
                       dtype=jnp.float32)


def init_params(key):
    ks = iter(jax.random.split(key, 8))

    def nrm(shape, std=0.02):
        return jax.random.normal(next(ks), shape, F32) * std

    scale = 1.0 / math.sqrt(HEAD_DIM)
    # Fold the attention softmax scale into the Q projection (weights + bias).
    qkv_w = nrm((DEPTH, EMBED_DIM, 3 * EMBED_DIM))
    qkv_w = qkv_w.at[:, :, :EMBED_DIM].multiply(scale)
    qkv_b = jnp.zeros((DEPTH, 1, 3 * EMBED_DIM), F32)
    qkv_b = qkv_b.at[:, :, :EMBED_DIM].multiply(scale)

    cls_token = nrm((1, EMBED_DIM))
    pos = nrm((SEQ, EMBED_DIM))

    return {
        # patch-embed conv (D, C, P, P) flattened to matmul weight (C*P*P, D)
        "patch_w": nrm((PATCH_DIM, EMBED_DIM)).astype(BF16),
        "patch_b": jnp.zeros((1, EMBED_DIM), F32),
        "cls_row": cls_token + pos[0:1],             # CLS token + its pos-embed
        "pos_tok": pos[1:SEQ],                       # (N_PATCH, D) patch pos-embeds
        "attn_bias": _make_attn_bias(),
        "ln1_g": jnp.ones((DEPTH, 1, EMBED_DIM), F32),
        "ln1_b": jnp.zeros((DEPTH, 1, EMBED_DIM), F32),
        "qkv_w": qkv_w.astype(BF16),
        "qkv_b": qkv_b,
        "proj_w": nrm((DEPTH, EMBED_DIM, EMBED_DIM)).astype(BF16),
        "proj_b": jnp.zeros((DEPTH, 1, EMBED_DIM), F32),
        "ln2_g": jnp.ones((DEPTH, 1, EMBED_DIM), F32),
        "ln2_b": jnp.zeros((DEPTH, 1, EMBED_DIM), F32),
        "fc1_w": nrm((DEPTH, EMBED_DIM, MLP_HIDDEN)).astype(BF16),
        "fc1_b": jnp.zeros((DEPTH, 1, MLP_HIDDEN), F32),
        "fc2_w": nrm((DEPTH, MLP_HIDDEN, EMBED_DIM)).astype(BF16),
        "fc2_b": jnp.zeros((DEPTH, 1, EMBED_DIM), F32),
        "ln_g": None,  # kept for clarity; final-LN params below
        "lnf_g": jnp.ones((1, EMBED_DIM), F32),
        "lnf_b": jnp.zeros((1, EMBED_DIM), F32),
        "head_w": nrm((EMBED_DIM, NUM_CLASSES_PAD)).astype(BF16),
        "head_b": jnp.zeros((1, NUM_CLASSES_PAD), F32),
    }


# ------------------------------- ViT forward ---------------------------------
def vit_forward(params, x):
    B, C, H, W = x.shape
    nh, nw = H // PATCH, W // PATCH
    # Patch extraction: non-overlapping conv == patch-flatten (c, ph, pw) + matmul.
    patches = (x.reshape(B, C, nh, PATCH, nw, PATCH)
                 .transpose(0, 2, 4, 1, 3, 5)
                 .reshape(B * nh * nw, C * PATCH * PATCH)).astype(BF16)
    logits = vit_stack(patches, params)        # single fused pallas_call
    return logits[:, :NUM_CLASSES]             # lane-padded head, sliced outside


# ---------------------------------- main -------------------------------------
if __name__ == "__main__":
    key = jax.random.PRNGKey(0)
    pkey, xkey = jax.random.split(key)
    params = init_params(pkey)
    # drop the placeholder entry so the jit pytree is all arrays
    params.pop("ln_g")
    x = jax.random.normal(xkey, (BATCH, IN_CHANS, IMG_SIZE, IMG_SIZE), F32)

    fwd = jax.jit(vit_forward)
    logits = fwd(params, x)
    jax.block_until_ready(logits)
    assert logits.shape == (BATCH, NUM_CLASSES) and logits.dtype == F32
    assert bool(jnp.all(jnp.isfinite(logits)))
    print("KERNEL_OK")
</pallas_src>

<mosaic_0001>
module attributes {stable_mosaic.version = 11 : i64} {
  func.func @_vit_kernel(%arg0: i32, %arg1: memref<8x768xbf16, #tpu.memory_space<vmem>>, %arg2: memref<768x128xbf16, #tpu.memory_space<vmem>>, %arg3: memref<1x128xf32, #tpu.memory_space<vmem>>, %arg4: memref<1x128xf32, #tpu.memory_space<vmem>>, %arg5: memref<4x128xf32, #tpu.memory_space<vmem>>, %arg6: memref<64x64xf32, #tpu.memory_space<vmem>>, %arg7: memref<1x1x128xf32, #tpu.memory_space<vmem>>, %arg8: memref<1x1x128xf32, #tpu.memory_space<vmem>>, %arg9: memref<1x128x384xbf16, #tpu.memory_space<vmem>>, %arg10: memref<1x1x384xf32, #tpu.memory_space<vmem>>, %arg11: memref<1x128x128xbf16, #tpu.memory_space<vmem>>, %arg12: memref<1x1x128xf32, #tpu.memory_space<vmem>>, %arg13: memref<1x1x128xf32, #tpu.memory_space<vmem>>, %arg14: memref<1x1x128xf32, #tpu.memory_space<vmem>>, %arg15: memref<1x128x512xbf16, #tpu.memory_space<vmem>>, %arg16: memref<1x1x512xf32, #tpu.memory_space<vmem>>, %arg17: memref<1x512x128xbf16, #tpu.memory_space<vmem>>, %arg18: memref<1x1x128xf32, #tpu.memory_space<vmem>>, %arg19: memref<1x128xf32, #tpu.memory_space<vmem>>, %arg20: memref<1x128xf32, #tpu.memory_space<vmem>>, %arg21: memref<128x128xbf16, #tpu.memory_space<vmem>>, %arg22: memref<1x128xf32, #tpu.memory_space<vmem>>, %arg23: memref<2x128xf32, #tpu.memory_space<vmem>>, %arg24: memref<16x128xf32, #tpu.memory_space<vmem>>) attributes {dimension_semantics = [#tpu.dimension_semantics<arbitrary>], iteration_bounds = array<i64: 2>, scalar_prefetch = 0 : i64, scratch_operands = 1 : i64, tpu.core_type = #tpu.core_type<tc>, window_params = [{pipeline_mode = #tpu.pipeline_mode<synchronous>, transform_indices = @transform_0, window_bounds = array<i64: 8, 768>}, {pipeline_mode = #tpu.pipeline_mode<synchronous>, transform_indices = @transform_1, window_bounds = array<i64: 768, 128>}, {pipeline_mode = #tpu.pipeline_mode<synchronous>, transform_indices = @transform_2, window_bounds = array<i64: 1, 128>}, {pipeline_mode = #tpu.pipeline_mode<synchronous>, transform_indices = @transform_3, window_bounds = array<i64: 1, 128>}, {pipeline_mode = #tpu.pipeline_mode<synchronous>, transform_indices = @transform_4, window_bounds = array<i64: 4, 128>}, {pipeline_mode = #tpu.pipeline_mode<synchronous>, transform_indices = @transform_5, window_bounds = array<i64: 64, 64>}, {transform_indices = @transform_6, window_bounds = array<i64: 1, 1, 128>}, {transform_indices = @transform_7, window_bounds = array<i64: 1, 1, 128>}, {transform_indices = @transform_8, window_bounds = array<i64: 1, 128, 384>}, {transform_indices = @transform_9, window_bounds = array<i64: 1, 1, 384>}, {transform_indices = @transform_10, window_bounds = array<i64: 1, 128, 128>}, {transform_indices = @transform_11, window_bounds = array<i64: 1, 1, 128>}, {transform_indices = @transform_12, window_bounds = array<i64: 1, 1, 128>}, {transform_indices = @transform_13, window_bounds = array<i64: 1, 1, 128>}, {transform_indices = @transform_14, window_bounds = array<i64: 1, 128, 512>}, {transform_indices = @transform_15, window_bounds = array<i64: 1, 1, 512>}, {transform_indices = @transform_16, window_bounds = array<i64: 1, 512, 128>}, {transform_indices = @transform_17, window_bounds = array<i64: 1, 1, 128>}, {pipeline_mode = #tpu.pipeline_mode<synchronous>, transform_indices = @transform_18, window_bounds = array<i64: 1, 128>}, {pipeline_mode = #tpu.pipeline_mode<synchronous>, transform_indices = @transform_19, window_bounds = array<i64: 1, 128>}, {pipeline_mode = #tpu.pipeline_mode<synchronous>, transform_indices = @transform_20, window_bounds = array<i64: 128, 128>}, {pipeline_mode = #tpu.pipeline_mode<synchronous>, transform_indices = @transform_21, window_bounds = array<i64: 1, 128>}, {pipeline_mode = #tpu.pipeline_mode<synchronous>, transform_indices = @transform_22, window_bounds = array<i64: 2, 128>}]} {
    %c0_i32 = arith.constant 0 : i32
    %0 = arith.cmpi eq, %arg0, %c0_i32 : i32
    %1 = arith.extui %0 : i1 to i32
    %c0_i32_0 = arith.constant 0 : i32
    %2 = arith.cmpi ne, %1, %c0_i32_0 : i32
    scf.if %2 {
      %c0_64 = arith.constant 0 : index
      %c0_65 = arith.constant 0 : index
      %163 = vector.load %arg1[%c0_64, %c0_65] : memref<8x768xbf16, #tpu.memory_space<vmem>>, vector<8x768xbf16>
      %c0_66 = arith.constant 0 : index
      %c0_67 = arith.constant 0 : index
      %164 = vector.load %arg2[%c0_66, %c0_67] : memref<768x128xbf16, #tpu.memory_space<vmem>>, vector<768x128xbf16>
      %cst_68 = arith.constant dense<0.000000e+00> : vector<8x128xf32>
      %165 = tpu.matmul %163, %164, %cst_68 {dimension_numbers = #tpu.dot_dimension_numbers<[1], [0], [0], [1], [0, 0, 1, 1], [], []>} : vector<8x768xbf16>, vector<768x128xbf16>, vector<8x128xf32> -> vector<8x128xf32>
      %c0_69 = arith.constant 0 : index
      %c0_70 = arith.constant 0 : index
      %166 = vector.load %arg3[%c0_69, %c0_70] : memref<1x128xf32, #tpu.memory_space<vmem>>, vector<1x128xf32>
      %167 = vector.broadcast %166 : vector<1x128xf32> to vector<8x128xf32>
      %168 = arith.addf %165, %167 : vector<8x128xf32>
      %c0_71 = arith.constant 0 : index
      %c0_72 = arith.constant 0 : index
      %169 = vector.load %arg4[%c0_71, %c0_72] : memref<1x128xf32, #tpu.memory_space<vmem>>, vector<1x128xf32>
      %c0_73 = arith.constant 0 : index
      %c0_74 = arith.constant 0 : index
      %170 = vector.load %arg5[%c0_73, %c0_74] : memref<4x128xf32, #tpu.memory_space<vmem>>, vector<4x128xf32>
      %cst_75 = arith.constant 0.000000e+00 : f32
      %171 = vector.broadcast %cst_75 : f32 to vector<3x128xf32>
      %172 = vector.extract_strided_slice %168 {offsets = [0, 0], sizes = [4, 128], strides = [1, 1]} : vector<8x128xf32> to vector<4x128xf32>
      %173 = arith.addf %172, %170 : vector<4x128xf32>
      %174 = vector.extract_strided_slice %168 {offsets = [4, 0], sizes = [4, 128], strides = [1, 1]} : vector<8x128xf32> to vector<4x128xf32>
      %175 = arith.addf %174, %170 : vector<4x128xf32>
      %176 = tpu.concatenate %169, %173, %171, %169, %175, %171 in 0 : vector<1x128xf32>, vector<4x128xf32>, vector<3x128xf32>, vector<1x128xf32>, vector<4x128xf32>, vector<3x128xf32> -> vector<16x128xf32>
      %c0_76 = arith.constant 0 : index
      %c0_77 = arith.constant 0 : index
      %177 = vector.load %arg24[%c0_76, %c0_77] : memref<16x128xf32, #tpu.memory_space<vmem>>, vector<16x128xf32>
      tpu.vector_store %arg24[%c0_76, %c0_77], %176 {strides = array<i32>} : memref<16x128xf32, #tpu.memory_space<vmem>>, vector<16x128xf32>,
    } else {
    }
    %c0 = arith.constant 0 : index
    %c0_1 = arith.constant 0 : index
    %3 = vector.load %arg24[%c0, %c0_1] : memref<16x128xf32, #tpu.memory_space<vmem>>, vector<16x128xf32>
    %c0_2 = arith.constant 0 : index
    %c0_3 = arith.constant 0 : index
    %c0_4 = arith.constant 0 : index
    %4 = vector.load %arg7[%c0_2, %c0_3, %c0_4] : memref<1x1x128xf32, #tpu.memory_space<vmem>>, vector<1x1x128xf32>
    %5 = vector.shape_cast %4 : vector<1x1x128xf32> to vector<1x128xf32>
    %c0_5 = arith.constant 0 : index
    %c0_6 = arith.constant 0 : index
    %c0_7 = arith.constant 0 : index
    %6 = vector.load %arg8[%c0_5, %c0_6, %c0_7] : memref<1x1x128xf32, #tpu.memory_space<vmem>>, vector<1x1x128xf32>
    %7 = vector.shape_cast %6 : vector<1x1x128xf32> to vector<1x128xf32>
    %cst = arith.constant dense<0.000000e+00> : vector<16xf32>
    %8 = vector.multi_reduction <add>, %3, %cst [1] : vector<16x128xf32> to vector<16xf32>
    %9 = vector.shape_cast %8 : vector<16xf32> to vector<16x1xf32>
    %cst_8 = arith.constant 1.280000e+02 : f32
    %10 = vector.broadcast %cst_8 : f32 to vector<16x1xf32>
    %11 = arith.divf %9, %10 : vector<16x1xf32>
    %12 = vector.broadcast %11 : vector<16x1xf32> to vector<16x128xf32>
    %13 = arith.subf %3, %12 : vector<16x128xf32>
    %14 = arith.mulf %13, %13 : vector<16x128xf32>
    %cst_9 = arith.constant dense<0.000000e+00> : vector<16xf32>
    %15 = vector.multi_reduction <add>, %14, %cst_9 [1] : vector<16x128xf32> to vector<16xf32>
    %16 = vector.shape_cast %15 : vector<16xf32> to vector<16x1xf32>
    %cst_10 = arith.constant 1.280000e+02 : f32
    %17 = vector.broadcast %cst_10 : f32 to vector<16x1xf32>
    %18 = arith.divf %16, %17 : vector<16x1xf32>
    %19 = vector.broadcast %11 : vector<16x1xf32> to vector<16x128xf32>
    %20 = arith.subf %3, %19 : vector<16x128xf32>
    %cst_11 = arith.constant 9.99999997E-7 : f32
    %21 = vector.broadcast %cst_11 : f32 to vector<16x1xf32>
    %22 = arith.addf %18, %21 : vector<16x1xf32>
    %23 = math.rsqrt %22 : vector<16x1xf32>
    %24 = vector.broadcast %23 : vector<16x1xf32> to vector<16x128xf32>
    %25 = arith.mulf %20, %24 : vector<16x128xf32>
    %26 = vector.broadcast %5 : vector<1x128xf32> to vector<16x128xf32>
    %27 = arith.mulf %25, %26 : vector<16x128xf32>
    %28 = vector.broadcast %7 : vector<1x128xf32> to vector<16x128xf32>
    %29 = arith.addf %27, %28 : vector<16x128xf32>
    %30 = arith.truncf %29 : vector<16x128xf32> to vector<16x128xbf16>
    %c0_12 = arith.constant 0 : index
    %c0_13 = arith.constant 0 : index
    %c0_14 = arith.constant 0 : index
    %31 = vector.load %arg9[%c0_12, %c0_13, %c0_14] : memref<1x128x384xbf16, #tpu.memory_space<vmem>>, vector<1x128x384xbf16>
    %32 = vector.shape_cast %31 : vector<1x128x384xbf16> to vector<128x384xbf16>
    %cst_15 = arith.constant dense<0.000000e+00> : vector<16x384xf32>
    %33 = tpu.matmul %30, %32, %cst_15 {dimension_numbers = #tpu.dot_dimension_numbers<[1], [0], [0], [1], [0, 0, 1, 1], [], []>} : vector<16x128xbf16>, vector<128x384xbf16>, vector<16x384xf32> -> vector<16x384xf32>
    %c0_16 = arith.constant 0 : index
    %c0_17 = arith.constant 0 : index
    %c0_18 = arith.constant 0 : index
    %34 = vector.load %arg10[%c0_16, %c0_17, %c0_18] : memref<1x1x384xf32, #tpu.memory_space<vmem>>, vector<1x1x384xf32>
    %35 = vector.shape_cast %34 : vector<1x1x384xf32> to vector<1x384xf32>
    %36 = vector.broadcast %35 : vector<1x384xf32> to vector<16x384xf32>
    %37 = arith.addf %33, %36 : vector<16x384xf32>
    %38 = vector.extract_strided_slice %37 {offsets = [0, 0], sizes = [8, 32], strides = [1, 1]} : vector<16x384xf32> to vector<8x32xf32>
    %39 = vector.extract_strided_slice %37 {offsets = [0, 32], sizes = [8, 32], strides = [1, 1]} : vector<16x384xf32> to vector<8x32xf32>
    %40 = vector.extract_strided_slice %37 {offsets = [0, 64], sizes = [8, 32], strides = [1, 1]} : vector<16x384xf32> to vector<8x32xf32>
    %41 = vector.extract_strided_slice %37 {offsets = [0, 96], sizes = [8, 32], strides = [1, 1]} : vector<16x384xf32> to vector<8x32xf32>
    %42 = vector.extract_strided_slice %37 {offsets = [8, 0], sizes = [8, 32], strides = [1, 1]} : vector<16x384xf32> to vector<8x32xf32>
    %43 = vector.extract_strided_slice %37 {offsets = [8, 32], sizes = [8, 32], strides = [1, 1]} : vector<16x384xf32> to vector<8x32xf32>
    %44 = vector.extract_strided_slice %37 {offsets = [8, 64], sizes = [8, 32], strides = [1, 1]} : vector<16x384xf32> to vector<8x32xf32>
    %45 = vector.extract_strided_slice %37 {offsets = [8, 96], sizes = [8, 32], strides = [1, 1]} : vector<16x384xf32> to vector<8x32xf32>
    %46 = tpu.concatenate %38, %39, %40, %41, %42, %43, %44, %45 in 0 : vector<8x32xf32>, vector<8x32xf32>, vector<8x32xf32>, vector<8x32xf32>, vector<8x32xf32>, vector<8x32xf32>, vector<8x32xf32>, vector<8x32xf32> -> vector<64x32xf32>
    %47 = arith.truncf %46 : vector<64x32xf32> to vector<64x32xbf16>
    %48 = vector.extract_strided_slice %37 {offsets = [0, 128], sizes = [8, 32], strides = [1, 1]} : vector<16x384xf32> to vector<8x32xf32>
    %49 = vector.extract_strided_slice %37 {offsets = [0, 160], sizes = [8, 32], strides = [1, 1]} : vector<16x384xf32> to vector<8x32xf32>
    %50 = vector.extract_strided_slice %37 {offsets = [0, 192], sizes = [8, 32], strides = [1, 1]} : vector<16x384xf32> to vector<8x32xf32>
    %51 = vector.extract_strided_slice %37 {offsets = [0, 224], sizes = [8, 32], strides = [1, 1]} : vector<16x384xf32> to vector<8x32xf32>
    %52 = vector.extract_strided_slice %37 {offsets = [8, 128], sizes = [8, 32], strides = [1, 1]} : vector<16x384xf32> to vector<8x32xf32>
    %53 = vector.extract_strided_slice %37 {offsets = [8, 160], sizes = [8, 32], strides = [1, 1]} : vector<16x384xf32> to vector<8x32xf32>
    %54 = vector.extract_strided_slice %37 {offsets = [8, 192], sizes = [8, 32], strides = [1, 1]} : vector<16x384xf32> to vector<8x32xf32>
    %55 = vector.extract_strided_slice %37 {offsets = [8, 224], sizes = [8, 32], strides = [1, 1]} : vector<16x384xf32> to vector<8x32xf32>
    %56 = tpu.concatenate %48, %49, %50, %51, %52, %53, %54, %55 in 0 : vector<8x32xf32>, vector<8x32xf32>, vector<8x32xf32>, vector<8x32xf32>, vector<8x32xf32>, vector<8x32xf32>, vector<8x32xf32>, vector<8x32xf32> -> vector<64x32xf32>
    %57 = arith.truncf %56 : vector<64x32xf32> to vector<64x32xbf16>
    %58 = vector.extract_strided_slice %37 {offsets = [0, 256], sizes = [8, 32], strides = [1, 1]} : vector<16x384xf32> to vector<8x32xf32>
    %59 = vector.extract_strided_slice %37 {offsets = [0, 288], sizes = [8, 32], strides = [1, 1]} : vector<16x384xf32> to vector<8x32xf32>
    %60 = vector.extract_strided_slice %37 {offsets = [0, 320], sizes = [8, 32], strides = [1, 1]} : vector<16x384xf32> to vector<8x32xf32>
    %61 = vector.extract_strided_slice %37 {offsets = [0, 352], sizes = [8, 32], strides = [1, 1]} : vector<16x384xf32> to vector<8x32xf32>
    %62 = vector.extract_strided_slice %37 {offsets = [8, 256], sizes = [8, 32], strides = [1, 1]} : vector<16x384xf32> to vector<8x32xf32>
    %63 = vector.extract_strided_slice %37 {offsets = [8, 288], sizes = [8, 32], strides = [1, 1]} : vector<16x384xf32> to vector<8x32xf32>
    %64 = vector.extract_strided_slice %37 {offsets = [8, 320], sizes = [8, 32], strides = [1, 1]} : vector<16x384xf32> to vector<8x32xf32>
    %65 = vector.extract_strided_slice %37 {offsets = [8, 352], sizes = [8, 32], strides = [1, 1]} : vector<16x384xf32> to vector<8x32xf32>
    %66 = tpu.concatenate %58, %59, %60, %61, %62, %63, %64, %65 in 0 : vector<8x32xf32>, vector<8x32xf32>, vector<8x32xf32>, vector<8x32xf32>, vector<8x32xf32>, vector<8x32xf32>, vector<8x32xf32>, vector<8x32xf32> -> vector<64x32xf32>
    %67 = arith.truncf %66 : vector<64x32xf32> to vector<64x32xbf16>
    %cst_19 = arith.constant dense<0.000000e+00> : vector<64x64xf32>
    %68 = tpu.matmul %47, %57, %cst_19 {dimension_numbers = #tpu.dot_dimension_numbers<[1], [1], [0], [0], [0, 0, 1, 0], [], []>} : vector<64x32xbf16>, vector<64x32xbf16>, vector<64x64xf32> -> vector<64x64xf32>
    %c0_20 = arith.constant 0 : index
    %c0_21 = arith.constant 0 : index
    %69 = vector.load %arg6[%c0_20, %c0_21] : memref<64x64xf32, #tpu.memory_space<vmem>>, vector<64x64xf32>
    %70 = arith.addf %68, %69 : vector<64x64xf32>
    %cst_22 = arith.constant dense<0xFF800000> : vector<64xf32>
    %71 = vector.multi_reduction <maximumf>, %70, %cst_22 [1] : vector<64x64xf32> to vector<64xf32>
    %72 = vector.shape_cast %71 : vector<64xf32> to vector<64x1xf32>
    %73 = vector.broadcast %72 : vector<64x1xf32> to vector<64x64xf32>
    %74 = arith.subf %70, %73 : vector<64x64xf32>
    %75 = math.exp %74 : vector<64x64xf32>
    %cst_23 = arith.constant dense<0.000000e+00> : vector<64xf32>
    %76 = vector.multi_reduction <add>, %75, %cst_23 [1] : vector<64x64xf32> to vector<64xf32>
    %77 = vector.shape_cast %76 : vector<64xf32> to vector<64x1xf32>
    %78 = tpu.reciprocal %77 {approx = true} : vector<64x1xf32> -> vector<64x1xf32>
    %79 = vector.broadcast %78 : vector<64x1xf32> to vector<64x64xf32>
    %80 = arith.mulf %75, %79 : vector<64x64xf32>
    %81 = arith.truncf %80 : vector<64x64xf32> to vector<64x64xbf16>
    %cst_24 = arith.constant dense<0.000000e+00> : vector<64x32xf32>
    %82 = tpu.matmul %81, %67, %cst_24 {dimension_numbers = #tpu.dot_dimension_numbers<[1], [0], [0], [1], [0, 0, 1, 1], [], []>} : vector<64x64xbf16>, vector<64x32xbf16>, vector<64x32xf32> -> vector<64x32xf32>
    %83 = vector.extract_strided_slice %82 {offsets = [0, 0], sizes = [8, 32], strides = [1, 1]} : vector<64x32xf32> to vector<8x32xf32>
    %84 = vector.extract_strided_slice %82 {offsets = [8, 0], sizes = [8, 32], strides = [1, 1]} : vector<64x32xf32> to vector<8x32xf32>
    %85 = vector.extract_strided_slice %82 {offsets = [16, 0], sizes = [8, 32], strides = [1, 1]} : vector<64x32xf32> to vector<8x32xf32>
    %86 = vector.extract_strided_slice %82 {offsets = [24, 0], sizes = [8, 32], strides = [1, 1]} : vector<64x32xf32> to vector<8x32xf32>
    %87 = tpu.concatenate %83, %84, %85, %86 in 1 : vector<8x32xf32>, vector<8x32xf32>, vector<8x32xf32>, vector<8x32xf32> -> vector<8x128xf32>
    %88 = vector.extract_strided_slice %82 {offsets = [32, 0], sizes = [8, 32], strides = [1, 1]} : vector<64x32xf32> to vector<8x32xf32>
    %89 = vector.extract_strided_slice %82 {offsets = [40, 0], sizes = [8, 32], strides = [1, 1]} : vector<64x32xf32> to vector<8x32xf32>
    %90 = vector.extract_strided_slice %82 {offsets = [48, 0], sizes = [8, 32], strides = [1, 1]} : vector<64x32xf32> to vector<8x32xf32>
    %91 = vector.extract_strided_slice %82 {offsets = [56, 0], sizes = [8, 32], strides = [1, 1]} : vector<64x32xf32> to vector<8x32xf32>
    %92 = tpu.concatenate %88, %89, %90, %91 in 1 : vector<8x32xf32>, vector<8x32xf32>, vector<8x32xf32>, vector<8x32xf32> -> vector<8x128xf32>
    %93 = tpu.concatenate %87, %92 in 0 : vector<8x128xf32>, vector<8x128xf32> -> vector<16x128xf32>
    %c0_25 = arith.constant 0 : index
    %c0_26 = arith.constant 0 : index
    %c0_27 = arith.constant 0 : index
    %94 = vector.load %arg12[%c0_25, %c0_26, %c0_27] : memref<1x1x128xf32, #tpu.memory_space<vmem>>, vector<1x1x128xf32>
    %95 = vector.shape_cast %94 : vector<1x1x128xf32> to vector<1x128xf32>
    %96 = vector.broadcast %95 : vector<1x128xf32> to vector<16x128xf32>
    %97 = arith.addf %3, %96 : vector<16x128xf32>
    %98 = arith.truncf %93 : vector<16x128xf32> to vector<16x128xbf16>
    %c0_28 = arith.constant 0 : index
    %c0_29 = arith.constant 0 : index
    %c0_30 = arith.constant 0 : index
    %99 = vector.load %arg11[%c0_28, %c0_29, %c0_30] : memref<1x128x128xbf16, #tpu.memory_space<vmem>>, vector<1x128x128xbf16>
    %100 = vector.shape_cast %99 : vector<1x128x128xbf16> to vector<128x128xbf16>
    %cst_31 = arith.constant dense<0.000000e+00> : vector<16x128xf32>
    %101 = tpu.matmul %98, %100, %cst_31 {dimension_numbers = #tpu.dot_dimension_numbers<[1], [0], [0], [1], [0, 0, 1, 1], [], []>} : vector<16x128xbf16>, vector<128x128xbf16>, vector<16x128xf32> -> vector<16x128xf32>
    %102 = arith.addf %97, %101 : vector<16x128xf32>
    %c0_32 = arith.constant 0 : index
    %c0_33 = arith.constant 0 : index
    %c0_34 = arith.constant 0 : index
    %103 = vector.load %arg13[%c0_32, %c0_33, %c0_34] : memref<1x1x128xf32, #tpu.memory_space<vmem>>, vector<1x1x128xf32>
    %104 = vector.shape_cast %103 : vector<1x1x128xf32> to vector<1x128xf32>
    %c0_35 = arith.constant 0 : index
    %c0_36 = arith.constant 0 : index
    %c0_37 = arith.constant 0 : index
    %105 = vector.load %arg14[%c0_35, %c0_36, %c0_37] : memref<1x1x128xf32, #tpu.memory_space<vmem>>, vector<1x1x128xf32>
    %106 = vector.shape_cast %105 : vector<1x1x128xf32> to vector<1x128xf32>
    %cst_38 = arith.constant dense<0.000000e+00> : vector<16xf32>
    %107 = vector.multi_reduction <add>, %102, %cst_38 [1] : vector<16x128xf32> to vector<16xf32>
    %108 = vector.shape_cast %107 : vector<16xf32> to vector<16x1xf32>
    %cst_39 = arith.constant 1.280000e+02 : f32
    %109 = vector.broadcast %cst_39 : f32 to vector<16x1xf32>
    %110 = arith.divf %108, %109 : vector<16x1xf32>
    %111 = vector.broadcast %110 : vector<16x1xf32> to vector<16x128xf32>
    %112 = arith.subf %102, %111 : vector<16x128xf32>
    %113 = arith.mulf %112, %112 : vector<16x128xf32>
    %cst_40 = arith.constant dense<0.000000e+00> : vector<16xf32>
    %114 = vector.multi_reduction <add>, %113, %cst_40 [1] : vector<16x128xf32> to vector<16xf32>
    %115 = vector.shape_cast %114 : vector<16xf32> to vector<16x1xf32>
    %cst_41 = arith.constant 1.280000e+02 : f32
    %116 = vector.broadcast %cst_41 : f32 to vector<16x1xf32>
    %117 = arith.divf %115, %116 : vector<16x1xf32>
    %118 = vector.broadcast %110 : vector<16x1xf32> to vector<16x128xf32>
    %119 = arith.subf %102, %118 : vector<16x128xf32>
    %cst_42 = arith.constant 9.99999997E-7 : f32
    %120 = vector.broadcast %cst_42 : f32 to vector<16x1xf32>
    %121 = arith.addf %117, %120 : vector<16x1xf32>
    %122 = math.rsqrt %121 : vector<16x1xf32>
    %123 = vector.broadcast %122 : vector<16x1xf32> to vector<16x128xf32>
    %124 = arith.mulf %119, %123 : vector<16x128xf32>
    %125 = vector.broadcast %104 : vector<1x128xf32> to vector<16x128xf32>
    %126 = arith.mulf %124, %125 : vector<16x128xf32>
    %127 = vector.broadcast %106 : vector<1x128xf32> to vector<16x128xf32>
    %128 = arith.addf %126, %127 : vector<16x128xf32>
    %129 = arith.truncf %128 : vector<16x128xf32> to vector<16x128xbf16>
    %c0_43 = arith.constant 0 : index
    %c0_44 = arith.constant 0 : index
    %c0_45 = arith.constant 0 : index
    %130 = vector.load %arg15[%c0_43, %c0_44, %c0_45] : memref<1x128x512xbf16, #tpu.memory_space<vmem>>, vector<1x128x512xbf16>
    %131 = vector.shape_cast %130 : vector<1x128x512xbf16> to vector<128x512xbf16>
    %cst_46 = arith.constant dense<0.000000e+00> : vector<16x512xf32>
    %132 = tpu.matmul %129, %131, %cst_46 {dimension_numbers = #tpu.dot_dimension_numbers<[1], [0], [0], [1], [0, 0, 1, 1], [], []>} : vector<16x128xbf16>, vector<128x512xbf16>, vector<16x512xf32> -> vector<16x512xf32>
    %c0_47 = arith.constant 0 : index
    %c0_48 = arith.constant 0 : index
    %c0_49 = arith.constant 0 : index
    %133 = vector.load %arg16[%c0_47, %c0_48, %c0_49] : memref<1x1x512xf32, #tpu.memory_space<vmem>>, vector<1x1x512xf32>
    %134 = vector.shape_cast %133 : vector<1x1x512xf32> to vector<1x512xf32>
    %135 = vector.broadcast %134 : vector<1x512xf32> to vector<16x512xf32>
    %136 = arith.addf %132, %135 : vector<16x512xf32>
    %137 = arith.mulf %136, %136 : vector<16x512xf32>
    %138 = arith.mulf %136, %137 : vector<16x512xf32>
    %cst_50 = arith.constant 4.471500e-02 : f32
    %139 = vector.broadcast %cst_50 : f32 to vector<16x512xf32>
    %140 = arith.mulf %139, %138 : vector<16x512xf32>
    %141 = arith.addf %136, %140 : vector<16x512xf32>
    %cst_51 = arith.constant 0.797884583 : f32
    %142 = vector.broadcast %cst_51 : f32 to vector<16x512xf32>
    %143 = arith.mulf %142, %141 : vector<16x512xf32>
    %144 = math.tanh %143 : vector<16x512xf32>
    %cst_52 = arith.constant 1.000000e+00 : f32
    %145 = vector.broadcast %cst_52 : f32 to vector<16x512xf32>
    %146 = arith.addf %145, %144 : vector<16x512xf32>
    %cst_53 = arith.constant 5.000000e-01 : f32
    %147 = vector.broadcast %cst_53 : f32 to vector<16x512xf32>
    %148 = arith.mulf %147, %146 : vector<16x512xf32>
    %149 = arith.mulf %136, %148 : vector<16x512xf32>
    %150 = arith.truncf %149 : vector<16x512xf32> to vector<16x512xbf16>
    %c0_54 = arith.constant 0 : index
    %c0_55 = arith.constant 0 : index
    %c0_56 = arith.constant 0 : index
    %151 = vector.load %arg17[%c0_54, %c0_55, %c0_56] : memref<1x512x128xbf16, #tpu.memory_space<vmem>>, vector<1x512x128xbf16>
    %152 = vector.shape_cast %151 : vector<1x512x128xbf16> to vector<512x128xbf16>
    %cst_57 = arith.constant dense<0.000000e+00> : vector<16x128xf32>
    %153 = tpu.matmul %150, %152, %cst_57 {dimension_numbers = #tpu.dot_dimension_numbers<[1], [0], [0], [1], [0, 0, 1, 1], [], []>} : vector<16x512xbf16>, vector<512x128xbf16>, vector<16x128xf32> -> vector<16x128xf32>
    %c0_58 = arith.constant 0 : index
    %c0_59 = arith.constant 0 : index
    %c0_60 = arith.constant 0 : index
    %154 = vector.load %arg18[%c0_58, %c0_59, %c0_60] : memref<1x1x128xf32, #tpu.memory_space<vmem>>, vector<1x1x128xf32>
    %155 = vector.shape_cast %154 : vector<1x1x128xf32> to vector<1x128xf32>
    %156 = vector.broadcast %155 : vector<1x128xf32> to vector<16x128xf32>
    %157 = arith.addf %153, %156 : vector<16x128xf32>
    %158 = arith.addf %102, %157 : vector<16x128xf32>
    %c0_61 = arith.constant 0 : index
    %c0_62 = arith.constant 0 : index
    %159 = vector.load %arg24[%c0_61, %c0_62] : memref<16x128xf32, #tpu.memory_space<vmem>>, vector<16x128xf32>
    tpu.vector_store %arg24[%c0_61, %c0_62], %158 {strides = array<i32>} : memref<16x128xf32, #tpu.memory_space<vmem>>, vector<16x128xf32>,
    %c1_i32 = arith.constant 1 : i32
    %160 = arith.cmpi eq, %arg0, %c1_i32 : i32
    %161 = arith.extui %160 : i1 to i32
    %c0_i32_63 = arith.constant 0 : i32
    %162 = arith.cmpi ne, %161, %c0_i32_63 : i32
    scf.if %162 {
      %163 = vector.extract_strided_slice %158 {offsets = [0, 0], sizes = [1, 128], strides = [1, 1]} : vector<16x128xf32> to vector<1x128xf32>
      %164 = vector.extract_strided_slice %158 {offsets = [8, 0], sizes = [1, 128], strides = [1, 1]} : vector<16x128xf32> to vector<1x128xf32>
      %165 = tpu.concatenate %163, %164 in 0 : vector<1x128xf32>, vector<1x128xf32> -> vector<2x128xf32>
      %c0_64 = arith.constant 0 : index
      %c0_65 = arith.constant 0 : index
      %166 = vector.load %arg19[%c0_64, %c0_65] : memref<1x128xf32, #tpu.memory_space<vmem>>, vector<1x128xf32>
      %c0_66 = arith.constant 0 : index
      %c0_67 = arith.constant 0 : index
      %167 = vector.load %arg20[%c0_66, %c0_67] : memref<1x128xf32, #tpu.memory_space<vmem>>, vector<1x128xf32>
      %cst_68 = arith.constant dense<0.000000e+00> : vector<2xf32>
      %168 = vector.multi_reduction <add>, %165, %cst_68 [1] : vector<2x128xf32> to vector<2xf32>
      %169 = vector.shape_cast %168 : vector<2xf32> to vector<2x1xf32>
      %cst_69 = arith.constant 1.280000e+02 : f32
      %170 = vector.broadcast %cst_69 : f32 to vector<2x1xf32>
      %171 = arith.divf %169, %170 : vector<2x1xf32>
      %172 = vector.broadcast %171 : vector<2x1xf32> to vector<2x128xf32>
      %173 = arith.subf %165, %172 : vector<2x128xf32>
      %174 = arith.mulf %173, %173 : vector<2x128xf32>
      %cst_70 = arith.constant dense<0.000000e+00> : vector<2xf32>
      %175 = vector.multi_reduction <add>, %174, %cst_70 [1] : vector<2x128xf32> to vector<2xf32>
      %176 = vector.shape_cast %175 : vector<2xf32> to vector<2x1xf32>
      %cst_71 = arith.constant 1.280000e+02 : f32
      %177 = vector.broadcast %cst_71 : f32 to vector<2x1xf32>
      %178 = arith.divf %176, %177 : vector<2x1xf32>
      %179 = vector.broadcast %171 : vector<2x1xf32> to vector<2x128xf32>
      %180 = arith.subf %165, %179 : vector<2x128xf32>
      %cst_72 = arith.constant 9.99999997E-7 : f32
      %181 = vector.broadcast %cst_72 : f32 to vector<2x1xf32>
      %182 = arith.addf %178, %181 : vector<2x1xf32>
      %183 = math.rsqrt %182 : vector<2x1xf32>
      %184 = vector.broadcast %183 : vector<2x1xf32> to vector<2x128xf32>
      %185 = arith.mulf %180, %184 : vector<2x128xf32>
      %186 = vector.broadcast %166 : vector<1x128xf32> to vector<2x128xf32>
      %187 = arith.mulf %185, %186 : vector<2x128xf32>
      %188 = vector.broadcast %167 : vector<1x128xf32> to vector<2x128xf32>
      %189 = arith.addf %187, %188 : vector<2x128xf32>
      %190 = arith.truncf %189 : vector<2x128xf32> to vector<2x128xbf16>
      %c0_73 = arith.constant 0 : index
      %c0_74 = arith.constant 0 : index
      %191 = vector.load %arg21[%c0_73, %c0_74] : memref<128x128xbf16, #tpu.memory_space<vmem>>, vector<128x128xbf16>
      %cst_75 = arith.constant dense<0.000000e+00> : vector<2x128xf32>
      %192 = tpu.matmul %190, %191, %cst_75 {dimension_numbers = #tpu.dot_dimension_numbers<[1], [0], [0], [1], [0, 0, 1, 1], [], []>} : vector<2x128xbf16>, vector<128x128xbf16>, vector<2x128xf32> -> vector<2x128xf32>
      %c0_76 = arith.constant 0 : index
      %c0_77 = arith.constant 0 : index
      %193 = vector.load %arg22[%c0_76, %c0_77] : memref<1x128xf32, #tpu.memory_space<vmem>>, vector<1x128xf32>
      %194 = vector.broadcast %193 : vector<1x128xf32> to vector<2x128xf32>
      %195 = arith.addf %192, %194 : vector<2x128xf32>
      %c0_78 = arith.constant 0 : index
      %c0_79 = arith.constant 0 : index
      %196 = vector.load %arg23[%c0_78, %c0_79] : memref<2x128xf32, #tpu.memory_space<vmem>>, vector<2x128xf32>
      tpu.vector_store %arg23[%c0_78, %c0_79], %195 {strides = array<i32>} : memref<2x128xf32, #tpu.memory_space<vmem>>, vector<2x128xf32>,
    } else {
    }
    return
  }
  func.func @transform_0(%arg0: i32) -> (i32, i32) {
    %c0_i32 = arith.constant 0 : i32
    %c0_i32_0 = arith.constant 0 : i32
    %c0_i32_1 = arith.constant 0 : i32
    return %c0_i32, %c0_i32_0 : i32, i32
  }
  func.func @transform_1(%arg0: i32) -> (i32, i32) {
    %c0_i32 = arith.constant 0 : i32
    %c0_i32_0 = arith.constant 0 : i32
    %c0_i32_1 = arith.constant 0 : i32
    return %c0_i32, %c0_i32_0 : i32, i32
  }
  func.func @transform_2(%arg0: i32) -> (i32, i32) {
    %c0_i32 = arith.constant 0 : i32
    %c0_i32_0 = arith.constant 0 : i32
    %c0_i32_1 = arith.constant 0 : i32
    return %c0_i32, %c0_i32_0 : i32, i32
  }
  func.func @transform_3(%arg0: i32) -> (i32, i32) {
    %c0_i32 = arith.constant 0 : i32
    %c0_i32_0 = arith.constant 0 : i32
    %c0_i32_1 = arith.constant 0 : i32
    return %c0_i32, %c0_i32_0 : i32, i32
  }
  func.func @transform_4(%arg0: i32) -> (i32, i32) {
    %c0_i32 = arith.constant 0 : i32
    %c0_i32_0 = arith.constant 0 : i32
    %c0_i32_1 = arith.constant 0 : i32
    return %c0_i32, %c0_i32_0 : i32, i32
  }
  func.func @transform_5(%arg0: i32) -> (i32, i32) {
    %c0_i32 = arith.constant 0 : i32
    %c0_i32_0 = arith.constant 0 : i32
    %c0_i32_1 = arith.constant 0 : i32
    return %c0_i32, %c0_i32_0 : i32, i32
  }
  func.func @transform_6(%arg0: i32) -> (i32, i32, i32) {
    %c0_i32 = arith.constant 0 : i32
    %c0_i32_0 = arith.constant 0 : i32
    %c0_i32_1 = arith.constant 0 : i32
    return %arg0, %c0_i32, %c0_i32_0 : i32, i32, i32
  }
  func.func @transform_7(%arg0: i32) -> (i32, i32, i32) {
    %c0_i32 = arith.constant 0 : i32
    %c0_i32_0 = arith.constant 0 : i32
    %c0_i32_1 = arith.constant 0 : i32
    return %arg0, %c0_i32, %c0_i32_0 : i32, i32, i32
  }
  func.func @transform_8(%arg0: i32) -> (i32, i32, i32) {
    %c0_i32 = arith.constant 0 : i32
    %c0_i32_0 = arith.constant 0 : i32
    %c0_i32_1 = arith.constant 0 : i32
    return %arg0, %c0_i32, %c0_i32_0 : i32, i32, i32
  }
  func.func @transform_9(%arg0: i32) -> (i32, i32, i32) {
    %c0_i32 = arith.constant 0 : i32
    %c0_i32_0 = arith.constant 0 : i32
    %c0_i32_1 = arith.constant 0 : i32
    return %arg0, %c0_i32, %c0_i32_0 : i32, i32, i32
  }
  func.func @transform_10(%arg0: i32) -> (i32, i32, i32) {
    %c0_i32 = arith.constant 0 : i32
    %c0_i32_0 = arith.constant 0 : i32
    %c0_i32_1 = arith.constant 0 : i32
    return %arg0, %c0_i32, %c0_i32_0 : i32, i32, i32
  }
  func.func @transform_11(%arg0: i32) -> (i32, i32, i32) {
    %c0_i32 = arith.constant 0 : i32
    %c0_i32_0 = arith.constant 0 : i32
    %c0_i32_1 = arith.constant 0 : i32
    return %arg0, %c0_i32, %c0_i32_0 : i32, i32, i32
  }
  func.func @transform_12(%arg0: i32) -> (i32, i32, i32) {
    %c0_i32 = arith.constant 0 : i32
    %c0_i32_0 = arith.constant 0 : i32
    %c0_i32_1 = arith.constant 0 : i32
    return %arg0, %c0_i32, %c0_i32_0 : i32, i32, i32
  }
  func.func @transform_13(%arg0: i32) -> (i32, i32, i32) {
    %c0_i32 = arith.constant 0 : i32
    %c0_i32_0 = arith.constant 0 : i32
    %c0_i32_1 = arith.constant 0 : i32
    return %arg0, %c0_i32, %c0_i32_0 : i32, i32, i32
  }
  func.func @transform_14(%arg0: i32) -> (i32, i32, i32) {
    %c0_i32 = arith.constant 0 : i32
    %c0_i32_0 = arith.constant 0 : i32
    %c0_i32_1 = arith.constant 0 : i32
    return %arg0, %c0_i32, %c0_i32_0 : i32, i32, i32
  }
  func.func @transform_15(%arg0: i32) -> (i32, i32, i32) {
    %c0_i32 = arith.constant 0 : i32
    %c0_i32_0 = arith.constant 0 : i32
    %c0_i32_1 = arith.constant 0 : i32
    return %arg0, %c0_i32, %c0_i32_0 : i32, i32, i32
  }
  func.func @transform_16(%arg0: i32) -> (i32, i32, i32) {
    %c0_i32 = arith.constant 0 : i32
    %c0_i32_0 = arith.constant 0 : i32
    %c0_i32_1 = arith.constant 0 : i32
    return %arg0, %c0_i32, %c0_i32_0 : i32, i32, i32
  }
  func.func @transform_17(%arg0: i32) -> (i32, i32, i32) {
    %c0_i32 = arith.constant 0 : i32
    %c0_i32_0 = arith.constant 0 : i32
    %c0_i32_1 = arith.constant 0 : i32
    return %arg0, %c0_i32, %c0_i32_0 : i32, i32, i32
  }
  func.func @transform_18(%arg0: i32) -> (i32, i32) {
    %c0_i32 = arith.constant 0 : i32
    %c0_i32_0 = arith.constant 0 : i32
    %c0_i32_1 = arith.constant 0 : i32
    return %c0_i32, %c0_i32_0 : i32, i32
  }
  func.func @transform_19(%arg0: i32) -> (i32, i32) {
    %c0_i32 = arith.constant 0 : i32
    %c0_i32_0 = arith.constant 0 : i32
    %c0_i32_1 = arith.constant 0 : i32
    return %c0_i32, %c0_i32_0 : i32, i32
  }
  func.func @transform_20(%arg0: i32) -> (i32, i32) {
    %c0_i32 = arith.constant 0 : i32
    %c0_i32_0 = arith.constant 0 : i32
    %c0_i32_1 = arith.constant 0 : i32
    return %c0_i32, %c0_i32_0 : i32, i32
  }
  func.func @transform_21(%arg0: i32) -> (i32, i32) {
    %c0_i32 = arith.constant 0 : i32
    %c0_i32_0 = arith.constant 0 : i32
    %c0_i32_1 = arith.constant 0 : i32
    return %c0_i32, %c0_i32_0 : i32, i32
  }
  func.func @transform_22(%arg0: i32) -> (i32, i32) {
    %c0_i32 = arith.constant 0 : i32
    %c0_i32_0 = arith.constant 0 : i32
    %c0_i32_1 = arith.constant 0 : i32
    return %c0_i32, %c0_i32_0 : i32, i32
  }
}

</mosaic_0001>

<bundles_post_ra>
// kernel: vit_forward.1
= control target key start
LH: loop header
LB: loop body
LE: loop exit
PB: predicated region body
PF: predicated region fallthrough
CT: control target
= control target key end

     0   :  { %s5494_s0 = inlined_call_operand.vmem [shape: bf16[8,768], index: 0, kind: input, shape index: {}]   ;;  %s5495_s1 = inlined_call_operand.hbm [shape: bf16[768,128], index: 1, kind: input, shape index: {}]   ;;  %s5496_s2 = inlined_call_operand.vmem [shape: f32[1,128], index: 2, kind: input, shape index: {}]   ;;  %s5497_s3 = inlined_call_operand.hbm [shape: f32[1,128], index: 3, kind: input, shape index: {}]   ;;  %s5498_s4 = inlined_call_operand.vmem [shape: f32[4,128], index: 4, kind: input, shape index: {}]   ;;  %s5499_s5 = inlined_call_operand.hbm [shape: f32[64,64], index: 5, kind: input, shape index: {}]   ;;  %s5500_s6 = inlined_call_operand.vmem [shape: f32[2,1,128], index: 6, kind: input, shape index: {}]   ;;  %s5501_s7 = inlined_call_operand.vmem [shape: f32[2,1,128], index: 7, kind: input, shape index: {}]   ;;  %s5502_s8 = inlined_call_operand.hbm [shape: bf16[2,128,384], index: 8, kind: input, shape index: {}]   ;;  %s5503_s9 = inlined_call_operand.vmem [shape: f32[2,1,384], index: 9, kind: input, shape index: {}]   ;;  %s5504_s10 = inlined_call_operand.vmem [shape: bf16[2,128,128], index: 10, kind: input, shape index: {}]   ;;  %s5505_s11 = inlined_call_operand.vmem [shape: f32[2,1,128], index: 11, kind: input, shape index: {}]   ;;  %s5506_s12 = inlined_call_operand.hbm [shape: f32[2,1,128], index: 12, kind: input, shape index: {}]   ;;  %s5507_s13 = inlined_call_operand.hbm [shape: f32[2,1,128], index: 13, kind: input, shape index: {}]   ;;  %s5508_s14 = inlined_call_operand.vmem [shape: bf16[2,128,512], index: 14, kind: input, shape index: {}]   ;;  %s5509_s15 = inlined_call_operand.vmem [shape: f32[2,1,512], index: 15, kind: input, shape index: {}]   ;;  %s5510_s16 = inlined_call_operand.vmem [shape: bf16[2,512,128], index: 16, kind: input, shape index: {}]   ;;  %s5511_s17 = inlined_call_operand.hbm [shape: f32[2,1,128], index: 17, kind: input, shape index: {}]   ;;  %s5512_s18 = inlined_call_operand.vmem [shape: f32[1,128], index: 18, kind: input, shape index: {}]   ;;  %s5513_s19 = inlined_call_operand.hbm [shape: f32[1,128], index: 19, kind: input, shape index: {}]   ;;  %s5514_s20 = inlined_call_operand.hbm [shape: bf16[128,128], index: 20, kind: input, shape index: {}]   ;;  %s5515_s21 = inlined_call_operand.hbm [shape: f32[1,128], index: 21, kind: input, shape index: {}]   ;;  %s5516_s22 = inlined_call_operand.hbm [shape: f32[2,128], index: 22, kind: output, shape index: {}]  }
   0x1   :  { %5522 = sst [smem:[#allocation31_spill]] %s5494_s0 }
   0x2   :  { %5523 = sst [smem:[#allocation32_spill]] %s5495_s1 }
   0x3   :  { %5524 = sst [smem:[#allocation33_spill]] %s5496_s2 }
   0x4   :  { %5525 = sst [smem:[#allocation34_spill]] %s5497_s3 }
   0x5   :  { %5526 = sst [smem:[#allocation35_spill]] %s5498_s4 }
   0x6   :  { %5527 = sst [smem:[#allocation36_spill]] %s5499_s5 }
   0x7   :  { %5528 = sst [smem:[#allocation37_spill]] %s5500_s6 }
   0x8   :  { %5529 = sst [smem:[#allocation38_spill]] %s5502_s8 }
   0x9   :  { %5530 = sst [smem:[#allocation39_spill]] %s5503_s9 }
   0xa   :  { %5531 = sst [smem:[#allocation40_spill]] %s5504_s10 }
   0xb   :  { %5532 = sst [smem:[#allocation41_spill]] %s5505_s11 }
   0xc   :  { %5533 = sst [smem:[#allocation42_spill]] %s5507_s13 }
   0xd   :  { %5534 = sst [smem:[#allocation43_spill]] %s5508_s14 }
   0xe   :  { %5535 = sst [smem:[#allocation44_spill]] %s5509_s15 }
   0xf   :  { %5536 = sst [smem:[#allocation45_spill]] %s5510_s16 }
  0x10   :  { %5537 = sst [smem:[#allocation46_spill]] %s5512_s18 }
  0x11   :  { %5538 = sst [smem:[#allocation47_spill]] %s5513_s19 }
  0x12   :  { %5539 = sst [smem:[#allocation48_spill]] %s5516_s22 }
  0x13   :  { %27 = vsyncpa [#allocation4], 0 }
  0x14   :  { %28 = vsyncpa [#allocation7], 0 }
  0x15   :  { %29 = vsyncpa [#allocation10], 0 }
  0x16   :  { %31 = vsyncpa [#allocation10 + $0x1], 0 }
  0x17   :  { %32 = vsyncpa [#allocation13], 0 }
  0x18   :  { %34 = vsyncpa [#allocation13 + $0x1], 0 }
  0x19   :  { %35 = vsyncpa [#allocation16], 0 }
  0x1a   :  { %36 = vsyncpa [#allocation19], 0 }
  0x1b   :  { %37 = vsyncpa [#allocation5], 0  ;;  %s4841_s3 = smov 0   ;;  %s4843_s28 = smov 0  }
  0x1c   :  { %s4845_s29 = smov 0   ;;  %s4847_s30 = smov 0  }
  0x1d LB: > { %5540 = sst [smem:[#allocation28_spill]] %s4703_s29  ;;  %s4865_s5 = sadd.s32 4294967295, %s4707_s30   ;;  %s4707_s30 = sphi %s4847_s30, %s5573_s30   ;;  %s4703_s29 = sphi %s4845_s29, %s5575_s29   ;;  %s4699_s28 = sphi %s4843_s28, %s5577_s28   ;;  %s4695_s3 = sphi %s4841_s3, %s5576_s3  }
  0x1e   : > { %s5541_s23 = sld [smem:[#allocation34_spill]]  ;;  %p3285_p0 = scmp.ge.s32.totalorder %s4707_s30, 1 }
  0x1f   : > { %p242_p1 = scmp.eq.s32.totalorder %s4865_s5, 0  ;;  %p591_p2 = scmp.lt.s32.totalorder %s4707_s30, 3 }
  0x20   : > { %p3286_p3 = scmp.ne.s32.totalorder %s4865_s5, 0  ;;  %s4709_s6 = smov [#allocation6]  }
  0x21   : > { %p4871_p4 = pnand %p3285_p0, %p591_p2  ;;  %s625_s25 = sshll.u32 %s4709_s6, 4  ;;  %s626_s25 = int_to_ptr.vmem [resolvable:$true] %s625_s25 }
  0x22   : > { %s5543_s19 = sld [smem:[#allocation47_spill]]  ;;  %s4710_s0 = smov [#allocation15]  }
  0x23   : > { %p4125_p5 = pneg %p4871_p4  ;;  %s4891_s6 = sadd.s32 1, %s4707_s30  }
  0x24   : > { %s623_s1 = sshll.u32 %s5541_s23, 4  ;;  %s657_s23 = sshll.u32 %s4710_s0, 4  ;;  %s624_s1 = int_to_ptr.hbm [resolvable:$true] %s623_s1  ;;  %s658_s23 = int_to_ptr.vmem [resolvable:$true] %s657_s23 }
  0x25   : > { %p4882_p6 = pnand %p4125_p5, %p242_p1  ;;  %5545 = sst [smem:[#allocation29_spill]] %s4891_s6 }
  0x26   : > { %s228_s26 = sadd.s32 1, %s4703_s29  ;;  %s225_s2 = ssub.s32 %s4707_s30, %s4891_s6 }
  0x27   : > { %4131 = dma.hbm_to_vmem [thread:$0]  (!%p4882_p6), %s624_s1, 16, %s626_s25, [#allocation7]  }
  0x28   : > { %s655_s27 = sshll.u32 %s5543_s19, 4  ;;  %p235_p7 = scmp.ne.s32.totalorder %s4703_s29, %s4699_s28  ;;  %s656_s27 = int_to_ptr.hbm [resolvable:$true] %s655_s27 }
  0x29   : > { %4137 = dma.hbm_to_vmem [thread:$0]  (!%p4882_p6), %s656_s27, 16, %s658_s23, [#allocation16]  }
  0x2a   : > { %p226_p8 = scmp.eq.s32.totalorder %s225_s2, 0  ;;  %p236_p9 = scmp.eq.s32.totalorder %s4707_s30, 0 }
  0x2b   : > { %p241_p10 = scmp.ne.s32.totalorder %s4699_s28, %s4695_s3  ;;  %p4163_p11 = scmp.lt.s32.totalorder %s4707_s30, 2 }
  0x2c   : > { %s4903_s19 = scalar_select %p226_p8, %s4703_s29, %s228_s26  }
  0x2d   : > { %p237_p12 = por %p236_p9, %p235_p7  ;;  %p4907_p13 = por %p242_p1, %p241_p10 }
  0x2e   : > { %5546 = sst [smem:[#allocation30_spill]] %s4903_s19  ;;  %s5521_s25 = sand.u32 1, %s4707_s30  }
  0x2f   : > { %s4913_s27 = sand.u32 1, %s4703_s29   ;;  %s4086_s23 = smul.u32 192, %s4707_s30 }
  0x30   : > { %s4085_s0 = smul.u32 192, %s4913_s27  ;;  %p4917_p0 = pnand %p4163_p11, %p237_p12 }
  0x31   : > { %s5549_s8 = sld [smem:[#allocation38_spill]]  ;;  %s4926_s29 = scalar_lea.sflag [#allocation10], %s5521_s25 }
  0x32   : > { %s710_s19 = scalar_lea.vmem [#allocation9], %s4085_s0  ;;  %p4385_p5 = pneg %p4917_p0 }
  0x33   : > { %s718_s22 = sshll.u32 %s710_s19, 4  ;;  %s719_s22 = int_to_ptr.vmem [resolvable:$true] %s718_s22 }
  0x37   : > { %s715_s26 = scalar_lea.hbm %s5549_s8, %s4086_s23  ;;  %s4388_s19 = scalar_lea.hbm %s5549_s8, 384 }
  0x38   : > { %s716_s18 = sshll.u32 %s715_s26, 4  ;;  %s717_s18 = int_to_ptr.hbm [resolvable:$true] %s716_s18 }
  0x39   : > { %s4381_s16 = sshra.s32 %s717_s18, 4  ;;  %s4382_s16 = int_to_ptr.hbm [resolvable:$true] %s4381_s16 }
  0x3a   : > { %s4383_s15 = scalar_lea.hbm %s4382_s16, 192  ;;  %p4389_p9 = scmp.lt.s32.totalorder %s4382_s16, %s5549_s8 }
  0x3b   : > { %p4384_p2 = scmp.ne.s32.totalorder %s4382_s16, %s4383_s15  ;;  %p4390_p10 = scmp.lt.s32.totalorder %s4388_s19, %s4383_s15 }
  0x3d   : > { %p4386_p7 = pnand %p4385_p5, %p4384_p2  ;;  %p4391_p11 = por %p4390_p10, %p4389_p9 }
  0x3f   : > { %p4387_p8 = pneg %p4386_p7 }
  0x41   : > { %p4392_p12 = pnand %p4391_p11, %p4387_p8 }
  0x43   : > { %4395 = shalt.err (!%p4392_p12)
}
  0x44   : > { %s4711_s26 = smov 192   ;;  %s4712_s25 = smov 12  }
  0x45   : > { %4147 = dma.hbm_to_vmem [thread:$0]  (!%p4917_p0), %s717_s18, 3072, %s719_s22, %s4926_s29, %s4711_s26, %s4711_s26, %s4712_s25  }
  0x46   : > { %s5550_s13 = sld [smem:[#allocation42_spill]]  ;;  %s769_s16 = scalar_lea.vmem [#allocation12], %s4913_s27 }
  0x47   : > { %s776_s15 = sshll.u32 %s769_s16, 4  ;;  %s5551_s19 = sand.u32 1, %s4707_s30   ;;  %s777_s15 = int_to_ptr.vmem [resolvable:$true] %s776_s15 }
  0x48   : > { %s4949_s3 = scalar_lea.sflag [#allocation13], %s5551_s19 }
  0x4c   : > { %s772_s14 = scalar_lea.hbm %s5550_s13, %s4707_s30  ;;  %s4418_s25 = scalar_lea.hbm %s5550_s13, 2 }
  0x4d   : > { %s774_s0 = sshll.u32 %s772_s14, 4  ;;  %s775_s0 = int_to_ptr.hbm [resolvable:$true] %s774_s0 }
  0x4e   : > { %s4411_s8 = sshra.s32 %s775_s0, 4  ;;  %s4412_s8 = int_to_ptr.hbm [resolvable:$true] %s4411_s8 }
  0x4f   : > { %s4413_s9 = scalar_lea.hbm %s4412_s8, 1  ;;  %p4419_p9 = scmp.lt.s32.totalorder %s4412_s8, %s5550_s13 }
  0x50   : > { %p4414_p2 = scmp.ne.s32.totalorder %s4412_s8, %s4413_s9  ;;  %p4420_p10 = scmp.lt.s32.totalorder %s4418_s25, %s4413_s9 }
  0x52   : > { %p4416_p7 = pnand %p4414_p2, %p4385_p5  ;;  %p4421_p11 = por %p4420_p10, %p4419_p9 }
  0x54   : > { %p4417_p8 = pneg %p4416_p7 }
  0x56   : > { %p4422_p12 = pnand %p4421_p11, %p4417_p8 }
  0x58   : > { %4425 = shalt.err (!%p4422_p12)
}
  0x59   : > { %4153 = dma.hbm_to_vmem [thread:$0]  (!%p4917_p0), %s775_s0, 16, %s777_s15, %s4949_s3  }
  0x5a   : > { %s5552_s16 = sld [smem:[#allocation32_spill]]  ;;  %s4713_s18 = smov [#allocation3]  }
  0x5b   : > { %s607_s22 = sshll.u32 %s4713_s18, 4  ;;  %s5553_s9 = sld [smem:[#allocation36_spill]]  ;;  %s608_s22 = int_to_ptr.vmem [resolvable:$true] %s607_s22 }
  0x5c   : > { %s4714_s26 = smov 64   ;;  %s4715_s13 = smov 4  }
  0x5d   : > { %s4716_s0 = smov [#allocation8]   ;;  %s4717_s6 = smov 128  }
  0x5e   : > { %s639_s15 = sshll.u32 %s4716_s0, 4  ;;  %s4718_s23 = smov 8   ;;  %s640_s15 = int_to_ptr.vmem [resolvable:$true] %s639_s15 }
  0x5f   : > { %s666_s14 = sshll.u32 %s5514_s20, 4  ;;  %s4719_s8 = smov [#allocation17]   ;;  %s667_s14 = int_to_ptr.hbm [resolvable:$true] %s666_s14 }
  0x60   : > { %s605_s19 = sshll.u32 %s5552_s16, 4  ;;  %s681_s0 = sshll.u32 %s5515_s21, 4  ;;  %s606_s19 = int_to_ptr.hbm [resolvable:$true] %s605_s19  ;;  %s682_s0 = int_to_ptr.hbm [resolvable:$true] %s681_s0 }
  0x61   : > { %s637_s25 = sshll.u32 %s5553_s9, 4  ;;  %s668_s9 = sshll.u32 %s4719_s8, 4  ;;  %s638_s25 = int_to_ptr.hbm [resolvable:$true] %s637_s25  ;;  %s669_s9 = int_to_ptr.vmem [resolvable:$true] %s668_s9 }
  0x62   : > { %4128 = dma.hbm_to_vmem [thread:$0]  (!%p4882_p6), %s606_s19, 6144, %s608_s22, [#allocation4], %s4714_s26, %s4714_s26, %s4715_s13  }
  0x63   : > { %4134 = dma.hbm_to_vmem [thread:$0]  (!%p4882_p6), %s638_s25, 1024, %s640_s15, [#allocation7], %s4717_s6, %s4717_s6, %s4718_s23  }
  0x64   : > { %4140 = dma.hbm_to_vmem [thread:$0]  (!%p4882_p6), %s667_s14, 1024, %s669_s9, [#allocation16], %s4714_s26, %s4714_s26, %s4715_s13  }
  0x65   : > { %s4720_s11 = smov [#allocation18]   ;;  %s755_s6 = scalar_lea.hbm %s5506_s12, %s4707_s30 }
  0x66   : > { %s683_s10 = sshll.u32 %s4720_s11, 4  ;;  %s757_s23 = sshll.u32 %s755_s6, 4  ;;  %s684_s10 = int_to_ptr.vmem [resolvable:$true] %s683_s10  ;;  %s758_s23 = int_to_ptr.hbm [resolvable:$true] %s757_s23 }
  0x67   : > { %4143 = dma.hbm_to_vmem [thread:$0]  (!%p4882_p6), %s682_s0, 16, %s684_s10, [#allocation19]  }
  0x68   : > { %s752_s16 = scalar_lea.vmem [#allocation11], %s4913_s27  ;;  %s4561_s8 = sshra.s32 %s758_s23, 4  ;;  %s4562_s8 = int_to_ptr.hbm [resolvable:$true] %s4561_s8 }
  0x69   : > { %s759_s18 = sshll.u32 %s752_s16, 4  ;;  %s4563_s19 = scalar_lea.hbm %s4562_s8, 1  ;;  %s760_s18 = int_to_ptr.vmem [resolvable:$true] %s759_s18 }
  0x6a   : > { %p4564_p2 = scmp.ne.s32.totalorder %s4562_s8, %s4563_s19  ;;  %s4568_s26 = scalar_lea.hbm %s5506_s12, 2 }
  0x6b   : > { %p4569_p6 = scmp.lt.s32.totalorder %s4562_s8, %s5506_s12  ;;  %p4570_p9 = scmp.lt.s32.totalorder %s4568_s26, %s4563_s19 }
  0x6c   : > { %p4566_p7 = pnand %p4564_p2, %p4385_p5 }
  0x6d   : > { %p4571_p10 = por %p4570_p9, %p4569_p6 }
  0x6e   : > { %p4567_p8 = pneg %p4566_p7 }
  0x70   : > { %p4572_p11 = pnand %p4571_p10, %p4567_p8 }
  0x72   : > { %4575 = shalt.err (!%p4572_p11)
}
  0x73   : > { %4150 = dma.hbm_to_vmem [thread:$0]  (!%p4917_p0), %s758_s23, 16, %s760_s18, %s4926_s29  }
  0x74   : > { %s812_s22 = scalar_lea.hbm %s5511_s17, %s4707_s30  ;;  %s809_s25 = scalar_lea.vmem [#allocation14], %s4913_s27 }
  0x75   : > { %s814_s0 = sshll.u32 %s812_s22, 4  ;;  %s816_s15 = sshll.u32 %s809_s25, 4  ;;  %s815_s0 = int_to_ptr.hbm [resolvable:$true] %s814_s0  ;;  %s817_s15 = int_to_ptr.vmem [resolvable:$true] %s816_s15 }
  0x76   : > { %s4591_s6 = sshra.s32 %s815_s0, 4  ;;  %s4598_s29 = scalar_lea.hbm %s5511_s17, 2  ;;  %s4592_s6 = int_to_ptr.hbm [resolvable:$true] %s4591_s6 }
  0x77   : > { %s4593_s16 = scalar_lea.hbm %s4592_s6, 1  ;;  %p4599_p8 = scmp.lt.s32.totalorder %s4592_s6, %s5511_s17 }
  0x78   : > { %p4594_p12 = scmp.ne.s32.totalorder %s4592_s6, %s4593_s16  ;;  %p4600_p6 = scmp.lt.s32.totalorder %s4598_s29, %s4593_s16 }
  0x7a   : > { %p4596_p2 = pnand %p4594_p12, %p4385_p5  ;;  %p4601_p9 = por %p4600_p6, %p4599_p8 }
  0x7c   : > { %p4597_p7 = pneg %p4596_p2 }
  0x7e   : > { %p4602_p10 = pnand %p4601_p9, %p4597_p7 }
  0x80   : > { %4605 = shalt.err (!%p4602_p10)
}
  0x81   : > { %4156 = dma.hbm_to_vmem [thread:$0]  (!%p4917_p0), %s815_s0, 16, %s817_s15, %s4949_s3  }
  0x82   : > { %825 = sbr.rel (%p4871_p4) target bundleno = 2779 (0xadb), region = 108 }
  0x87   : > { %4666 = dma.done.wait (%p242_p1), [#allocation4], 6144  }
  0x88   : > { %4668 = vsyncadd (%p242_p1), [#allocation4], 4294961152 }
  0x89   : > { %4670 = dma.done.wait (%p242_p1), [#allocation7], 1040  }
  0x8a   : > { %4672 = vsyncadd (%p242_p1), [#allocation7], 4294966256  ;;  %s842_s30 = sand.u32 1, %s4865_s5   ;;  %s5029_s27 = sand.u32 1, %s4699_s28  }
  0x8b   : > { %s4087_s24 = smul.u32 192, %s5029_s27  ;;  %s843_s2 = scalar_lea.sflag [#allocation10], %s842_s30 }
  0x8d   : > { %s5032_s3 = scalar_lea.vmem [#allocation9], %s4087_s24 }
  0x8e   : > { %4674 = dma.done.wait (%p4907_p13), %s843_s2, 3088  }
  0x8f   : > { %4676 = vsyncadd (%p4907_p13), %s843_s2, 4294964208  ;;  %s862_s13 = scalar_lea.sflag [#allocation13], %s842_s30 }
  0x90   : > { %4678 = dma.done.wait (%p4907_p13), %s862_s13, 32  }
  0x91   : > { %4680 = vsyncadd (%p4907_p13), %s862_s13, 4294967264 }
  0x92   : > { %4682 = dma.done.wait (%p242_p1), [#allocation16], 1040  }
  0x93   : > { %4684 = vsyncadd (%p242_p1), [#allocation16], 4294966256 }
  0x94   : > { %4686 = dma.done.wait (%p242_p1), [#allocation19], 16  }
  0x95   : > { %4688 = vsyncadd (%p242_p1), [#allocation19], 4294967280  ;;  %p989_p4 = scmp.lt.s32.totalorder %s4865_s5, 1  ;;  %s5555_s29 = sld [smem:[#allocation40_spill]] }
  0x96   : > { %s5556_s24 = sld [smem:[#allocation41_spill]] }
  0x97   : > { %s5055_s4 = scalar_select %p989_p4, %s4865_s5, 1 }
  0x98   : > { %s5557_s10 = sld [smem:[#allocation39_spill]] }
  0x99   : > { %s4088_s6 = smul.u32 3, %s5055_s4  ;;  %s3930_s16 = sshll.u32 %s5055_s4, 6 }
  0x9a   : > { %s3931_s9 = sshll.u32 %s5055_s4, 8  ;;  %s5558_s25 = sld [smem:[#allocation43_spill]] }
  0x9b   : > { %s5070_s23 = scalar_lea.vmem %s5555_s29, %s3930_s16  ;;  %s3305_s15 = sshll.u32 %s5055_s4, 2 }
  0x9c   : > { %s1006_s2 = scalar_lea.vmem %s5556_s24, %s5055_s4  ;;  %s5559_s16 = sld [smem:[#allocation44_spill]] }
  0x9d   : > { %s5560_s30 = sld [smem:[#allocation45_spill]] }
  0x9e   : > { %s5079_s14 = scalar_lea.vmem %s5557_s10, %s4088_s6  ;;  %s5563_s29 = sld [smem:[#allocation35_spill]] (!%p3286_p3) }
  0x9f   : > { %1025 = sbr.rel (%p3286_p3) target bundleno = 366 (0x16e), region = 152 }
  0xa0   : > { %s5085_s11 = scalar_lea.vmem %s5558_s25, %s3931_s9  ;;  %s5562_s25 = sld [smem:[#allocation33_spill]] (!%p3286_p3) }
  0xa2   : > { %s5091_s19 = scalar_lea.vmem %s5559_s16, %s3305_s15  ;;  %s5561_s15 = sld [smem:[#allocation31_spill]] (!%p3286_p3) }
  0xa3   : > { %s5096_s24 = scalar_lea.vmem %s5560_s30, %s3931_s9 }
  0xa4   : > { %v3940_v0 = vld [vmem:[#allocation3 + $0x38] sm:$0xff]  ;;  %v3939_v2 = vld [vmem:[#allocation3 + $0x30] sm:$0xff]  ;;  %v3938_v8 = vld [vmem:[#allocation3 + $0x28] sm:$0xff]  ;;  %vm1529_vm0 = vcmask 1040384   ;;  %vm1531_vm1 = vcmask 1044480  }
  0xa5   : > { %v3948_v1 = vld [vmem:[#allocation3 + $0x78] sm:$0xff]  ;;  %1438 = vmatpush.bf16.msra.mxu0 %v3940_v0  ;;  %v3947_v3 = vld [vmem:[#allocation3 + $0x70] sm:$0xff]  ;;  %v3946_v9 = vld [vmem:[#allocation3 + $0x68] sm:$0xff] }
  0xa6   : > { %1451 = vmatpush.bf16.msra.mxu1 %v3948_v1  ;;  %v3956_v4 = vld [vmem:[#allocation3 + $0xb8] sm:$0xff]  ;;  %v3955_v6 = vld [vmem:[#allocation3 + $0xb0] sm:$0xff]  ;;  %v3954_v10 = vld [vmem:[#allocation3 + $0xa8] sm:$0xff] }
  0xa7   : > { %v3964_v5 = vld [vmem:[#allocation3 + $0xf8] sm:$0xff]  ;;  %1464 = vmatpush.bf16.msra.mxu2 %v3956_v4  ;;  %v3963_v7 = vld [vmem:[#allocation3 + $0xf0] sm:$0xff]  ;;  %v3962_v11 = vld [vmem:[#allocation3 + $0xe8] sm:$0xff] }
  0xa8   : > { %1477 = vmatpush.bf16.msra.mxu3 %v3964_v5  ;;  %v3937_v12 = vld [vmem:[#allocation3 + $0x20] sm:$0xff]  ;;  %v3936_v16 = vld [vmem:[#allocation3 + $0x18] sm:$0xff]  ;;  %v3935_v20 = vld [vmem:[#allocation3 + $0x10] sm:$0xff] }
  0xa9   : > { %1439 = vmatpush.bf16.msra.mxu0 %v3939_v2  ;;  %v3945_v13 = vld [vmem:[#allocation3 + $0x60] sm:$0xff]  ;;  %v3944_v17 = vld [vmem:[#allocation3 + $0x58] sm:$0xff]  ;;  %v3943_v21 = vld [vmem:[#allocation3 + $0x50] sm:$0xff] }
  0xaa   : > { %1452 = vmatpush.bf16.msra.mxu1 %v3947_v3  ;;  %v3953_v14 = vld [vmem:[#allocation3 + $0xa0] sm:$0xff]  ;;  %v3952_v18 = vld [vmem:[#allocation3 + $0x98] sm:$0xff]  ;;  %v3951_v22 = vld [vmem:[#allocation3 + $0x90] sm:$0xff] }
  0xab   : > { %1465 = vmatpush.bf16.msra.mxu2 %v3955_v6  ;;  %v3961_v15 = vld [vmem:[#allocation3 + $0xe0] sm:$0xff]  ;;  %v3960_v19 = vld [vmem:[#allocation3 + $0xd8] sm:$0xff]  ;;  %v3959_v23 = vld [vmem:[#allocation3 + $0xd0] sm:$0xff] }
  0xac   : > { %1478 = vmatpush.bf16.msra.mxu3 %v3963_v7  ;;  %v3934_v24 = vld [vmem:[#allocation3 + $0x8] sm:$0xff]  ;;  %v1026_v26 = vld [vmem:[%s5561_s15] sm:$0xff]  ;;  %v1027_v31 = vld [vmem:[%s5561_s15 + $0x8] sm:$0xff] }
  0xad   : > { %1440 = vmatpush.bf16.msra.mxu0 %v3938_v8  ;;  %v3942_v25 = vld [vmem:[#allocation3 + $0x48] sm:$0xff]  ;;  %v1132_v28 = vunpack.c.l.b16 %v1026_v26  ;;  %v1133_v30 = vunpack.c.h.b16 %v1026_v26  ;;  %v3933_v32 = vld [vmem:[#allocation3] sm:$0xff]  ;;  %v3972_v34 = vld [vmem:[#allocation3 + $0x138] sm:$0xff]  ;;  %v1134_v37 = vunpack.c.l.b16 %v1027_v31  ;;  %v1135_v40 = vunpack.c.h.b16 %v1027_v31 }
  0xae   : > { %1453 = vmatpush.bf16.msra.mxu1 %v3946_v9  ;;  %v3950_v27 = vld [vmem:[#allocation3 + $0x88] sm:$0xff]  ;;  %v3941_v33 = vld [vmem:[#allocation3 + $0x40] sm:$0xff]  ;;  %v3980_v35 = vld [vmem:[#allocation3 + $0x178] sm:$0xff] }
  0xaf   : > { %1466 = vmatpush.bf16.msra.mxu2 %v3954_v10  ;;  %v3958_v29 = vld [vmem:[#allocation3 + $0xc8] sm:$0xff]  ;;  %v3949_v36 = vld [vmem:[#allocation3 + $0x80] sm:$0xff]  ;;  %v1138_v38 = vpack.c.b16 %v1132_v28, %v1132_v28  ;;  %v1139_v39 = vpack.c.b16 %v1133_v30, %v1133_v30  ;;  %v3971_v42 = vld [vmem:[#allocation3 + $0x130] sm:$0xff]  ;;  %v1140_v44 = vpack.c.b16 %v1134_v37, %v1134_v37  ;;  %v1141_v45 = vpack.c.b16 %v1135_v40, %v1135_v40 }
  0xb0   : > { %1479 = vmatpush.bf16.msra.mxu3 %v3962_v11  ;;  %v3957_v41 = vld [vmem:[#allocation3 + $0xc0] sm:$0xff]  ;;  %v3979_v43 = vld [vmem:[#allocation3 + $0x170] sm:$0xff]  ;;  %v3970_v46 = vld [vmem:[#allocation3 + $0x128] sm:$0xff] }
  0xb1   : > { %1441 = vmatpush.bf16.msra.mxu0 %v3937_v12  ;;  %v3978_v47 = vld [vmem:[#allocation3 + $0x168] sm:$0xff]  ;;  %v3969_v48 = vld [vmem:[#allocation3 + $0x120] sm:$0xff]  ;;  %v3968_v50 = vld [vmem:[#allocation3 + $0x118] sm:$0xff] }
  0xb2   : > { %1454 = vmatpush.bf16.msra.mxu1 %v3945_v13  ;;  %v3977_v49 = vld [vmem:[#allocation3 + $0x160] sm:$0xff]  ;;  %v3976_v51 = vld [vmem:[#allocation3 + $0x158] sm:$0xff]  ;;  %v3967_v52 = vld [vmem:[#allocation3 + $0x110] sm:$0xff] }
  0xb3   : > { %1467 = vmatpush.bf16.msra.mxu2 %v3953_v14  ;;  %v3975_v53 = vld [vmem:[#allocation3 + $0x150] sm:$0xff]  ;;  %v3966_v54 = vld [vmem:[#allocation3 + $0x108] sm:$0xff]  ;;  %v1028_v56 = vld [vmem:[%s5561_s15 + $0x10] sm:$0xff] }
  0xb4   : > { %1480 = vmatpush.bf16.msra.mxu3 %v3961_v15  ;;  %v3974_v55 = vld [vmem:[#allocation3 + $0x148] sm:$0xff]  ;;  %v1136_v57 = vunpack.c.l.b16 %v1028_v56  ;;  %v1137_v58 = vunpack.c.h.b16 %v1028_v56  ;;  %v3965_v59 = vld [vmem:[#allocation3 + $0x100] sm:$0xff]  ;;  %v4221_v5 = vld [vmem:[%s5562_s25] ss:$0 sm:$0xff] }
  0xb5   : > { %1442 = vmatpush.bf16.msra.mxu0 %v3936_v16  ;;  %v3973_v60 = vld [vmem:[#allocation3 + $0x140] sm:$0xff]  ;;  %v1517_v11 = vld [vmem:[%s5563_s29] sm:$0xf] }
  0xb6   : > { %1455 = vmatpush.bf16.msra.mxu1 %v3944_v17  ;;  %v1142_v61 = vpack.c.b16 %v1136_v57, %v1136_v57  ;;  %v1143_v62 = vpack.c.b16 %v1137_v58, %v1137_v58  ;;  %v1520_v16 = vrot.slane %v1517_v11, 4 }
  0xb7   : > { %1468 = vmatpush.bf16.msra.mxu2 %v3952_v18 }
  0xb8   : > { %1481 = vmatpush.bf16.msra.mxu3 %v3960_v19 }
  0xb9   : > { %1443 = vmatpush.bf16.msra.mxu0 %v3935_v20  ;;  %v1516_v20 = vld [vmem:[#allocation6] sm:$0x1] }
  0xba   : > { %1456 = vmatpush.bf16.msra.mxu1 %v3943_v21 }
  0xbb   : > { %1469 = vmatpush.bf16.msra.mxu2 %v3951_v22 }
  0xbc   : > { %1482 = vmatpush.bf16.msra.mxu3 %v3959_v23 }
  0xbd   : > { %1444 = vmatpush.bf16.msra.mxu0 %v3934_v24 }
  0xbe   : > { %1457 = vmatpush.bf16.msra.mxu1 %v3942_v25 }
  0xbf   : > { %1470 = vmatpush.bf16.msra.mxu2 %v3950_v27 }
  0xc0   : > { %1483 = vmatpush.bf16.msra.mxu3 %v3958_v29 }
  0xc1   : > { %1445 = vmatpush.bf16.msra.mxu0 %v3933_v32 }
  0xc2   : > { %1458 = vmatpush.bf16.msra.mxu1 %v3941_v33 }
  0xc3   : > { %1471 = vmatpush.bf16.msra.mxu2 %v3949_v36 }
  0xc4   : > { %1446 = vmatmul.bf16.vlgmr.msra.gmra.mxu0 %v1138_v38  ;;  %1484 = vmatpush.bf16.msra.mxu3 %v3957_v41 }
  0xc5   : > { %1490 = vmatpush.bf16.msrb.mxu0 %v3972_v34  ;;  %1459 = vmatmul.bf16.vlgmr.msra.gmra.mxu1 %v1139_v39 }
  0xc6   : > { %1503 = vmatpush.bf16.msrb.mxu1 %v3980_v35  ;;  %1472 = vmatmul.bf16.vlgmr.msra.gmra.mxu2 %v1140_v44 }
  0xc7   : > { %1485 = vmatmul.bf16.vlgmr.msra.gmra.mxu3 %v1141_v45 }
  0xc9   : > { %1491 = vmatpush.bf16.msrb.mxu0 %v3971_v42 }
  0xca   : > { %1504 = vmatpush.bf16.msrb.mxu1 %v3979_v43 }
  0xcd   : > { %1492 = vmatpush.bf16.msrb.mxu0 %v3970_v46 }
  0xce   : > { %1505 = vmatpush.bf16.msrb.mxu1 %v3978_v47 }
  0xd1   : > { %1493 = vmatpush.bf16.msrb.mxu0 %v3969_v48 }
  0xd2   : > { %1506 = vmatpush.bf16.msrb.mxu1 %v3977_v49 }
  0xd5   : > { %1494 = vmatpush.bf16.msrb.mxu0 %v3968_v50 }
  0xd6   : > { %1507 = vmatpush.bf16.msrb.mxu1 %v3976_v51 }
  0xd9   : > { %1495 = vmatpush.bf16.msrb.mxu0 %v3967_v52 }
  0xda   : > { %1508 = vmatpush.bf16.msrb.mxu1 %v3975_v53 }
  0xdd   : > { %1496 = vmatpush.bf16.msrb.mxu0 %v3966_v54 }
  0xde   : > { %1509 = vmatpush.bf16.msrb.mxu1 %v3974_v55 }
  0xe1   : > { %1497 = vmatpush.bf16.msrb.mxu0 %v3965_v59 }
  0xe2   : > { %1510 = vmatpush.bf16.msrb.mxu1 %v3973_v60 }
  0xe4   : > { %1498 = vmatmul.bf16.vlgmr.msrb.gmra.mxu0 %v1142_v61 }
  0xe5   : > { %1511 = vmatmul.bf16.vlgmr.msrb.gmra.mxu1 %v1143_v62 }
 0x141   : > { %v1447_v63 = vpop.f32.mrf.mxu0 }
 0x142   : > { %v1460_v0 = vpop.f32.mrf.mxu1  ;;  %v1448_v6 = vadd.f32 %v4221_v5, %v1447_v63 }
 0x144   : > { %v1461_v9 = vadd.f32 %v1460_v0, %v1448_v6 }
 0x149   : > { %v1449_v1 = vpop.f32.mrf.mxu0  ;;  %v1473_v3 = vpop.f32.mrf.mxu2 }
 0x14a   : > { %v1462_v2 = vpop.f32.mrf.mxu1  ;;  %v1486_v4 = vpop.f32.mrf.mxu3  ;;  %v1474_v10 = vadd.f32 %v1473_v3, %v1461_v9 }
 0x14c   : > { %v1487_v12 = vadd.f32 %v1486_v4, %v1474_v10 }
 0x151   : > { %v1475_v7 = vpop.f32.mrf.mxu2 }
 0x152   : > { %v1488_v8 = vpop.f32.mrf.mxu3 }
 0x161   : > { %v1499_v13 = vpop.f32.mrf.mxu0 }
 0x162   : > { %v1512_v14 = vpop.f32.mrf.mxu1  ;;  %v1500_v15 = vadd.f32 %v1499_v13, %v1487_v12 }
 0x164   : > { %v1513_v17 = vadd.f32 %v1512_v14, %v1500_v15 }
 0x166   : > { %v1518_v18 = vadd.f32 %v1517_v11, %v1513_v17  ;;  %v1522_v19 = vadd.f32 %v1520_v16, %v1513_v17 }
 0x168   : > { %v1524_v21 = vrot.slane %v1518_v18, 7  ;;  %v1527_v22 = vrot.slane %v1522_v19, 3 }
 0x169   : > { %v1501_v23 = vpop.f32.mrf.mxu0 }
 0x16a   : > { %v1514_v24 = vpop.f32.mrf.mxu1  ;;  %v1530_v25 = vsel %vm1529_vm0, %v1516_v20, %v1524_v21  ;;  %v1533_v26 = vsel %vm1529_vm0, %v1516_v20, %v1527_v22 }
 0x16b   : > { %v1532_v27 = vsel %vm1531_vm1, %v1530_v25, 0.0  ;;  %v1534_v28 = vsel %vm1531_vm1, %v1533_v26, 0.0 }
 0x16c   : > { %1535 = vst [vmem:[#allocation2] sm:$0xff] %v1532_v27 }
 0x16d   : > { %1536 = vst [vmem:[#allocation2 + $0x8] sm:$0xff] %v1534_v28 }
 0x16e PF: > { %v4721_v31 = vmov 128.0   ;;  %v3587_v46 = vld [vmem:[%s5032_s3 + $0xa8] sm:$0xf]  ;;  %v4003_v47 = vld [vmem:[%s5032_s3 + $0xb0] sm:$0xf0]  ;;  %s5564_s30 = sld [smem:[#allocation37_spill]]  ;;  %s5566_s13 = scalar_lea.vmem %s5501_s7, %s5055_s4 }
 0x16f   : > { %4258 = vrcp.f32 %v4721_v31  ;;  %v4002_v48 = vld [vmem:[%s5032_s3 + $0xac] sm:$0xf]  ;;  %v3588_v49 = vor.u32 %v4003_v47, %v3587_v46  ;;  %v3589_v50 = vld [vmem:[%s5032_s3 + $0xb4] sm:$0xf0]  ;;  %v3595_v51 = vld [vmem:[%s5032_s3 + $0xb0] sm:$0xf] }
 0x170   : > { %v4004_v52 = vld [vmem:[%s5032_s3 + $0xb8] sm:$0xf0]  ;;  %v3592_v53 = vor.u32 %v4002_v48, %v3589_v50  ;;  %v3575_v55 = vld [vmem:[%s5032_s3 + $0x90] sm:$0xf]  ;;  %v3999_v57 = vld [vmem:[%s5032_s3 + $0x94] sm:$0xf] }
 0x171   : > { %v3596_v54 = vor.u32 %v4004_v52, %v3595_v51  ;;  %1767 = vmatpush.bf16.msra.mxu0 %v3588_v49  ;;  %v4000_v56 = vld [vmem:[%s5032_s3 + $0x98] sm:$0xf0]  ;;  %v3577_v59 = vld [vmem:[%s5032_s3 + $0x9c] sm:$0xf0]  ;;  %v3583_v60 = vld [vmem:[%s5032_s3 + $0x98] sm:$0xf] }
 0x172   : > { %1781 = vmatpush.bf16.msra.mxu1 %v3592_v53  ;;  %v3576_v58 = vor.u32 %v4000_v56, %v3575_v55  ;;  %v4001_v61 = vld [vmem:[%s5032_s3 + $0xa0] sm:$0xf0]  ;;  %v3580_v62 = vor.u32 %v3999_v57, %v3577_v59  ;;  %v3563_v0 = vld [vmem:[%s5032_s3 + $0x78] sm:$0xf]  ;;  %v3996_v2 = vld [vmem:[%s5032_s3 + $0x7c] sm:$0xf] }
 0x173   : > { %v5115_v29 = vld [vmem:[#allocation2] sm:$0xff]  ;;  %1795 = vmatpush.bf16.msra.mxu2 %v3596_v54  ;;  %v3584_v63 = vor.u32 %v4001_v61, %v3583_v60  ;;  %v3997_v1 = vld [vmem:[%s5032_s3 + $0x80] sm:$0xf0]  ;;  %v3565_v4 = vld [vmem:[%s5032_s3 + $0x84] sm:$0xf0]  ;;  %s4722_s1 = smov 64  }
 0x174   : > { %1541 = vadd.xlane.f32.xlu0 %v5115_v29  ;;  %v5118_v30 = vld [vmem:[#allocation2 + $0x8] sm:$0xff]  ;;  %v3564_v3 = vor.u32 %v3997_v1, %v3563_v0  ;;  %v3571_v5 = vld [vmem:[%s5032_s3 + $0x80] sm:$0xf]  ;;  %v3998_v6 = vld [vmem:[%s5032_s3 + $0x88] sm:$0xf0]  ;;  %v3568_v7 = vor.u32 %v3996_v2, %v3565_v4  ;;  %s5565_s26 = scalar_lea.vmem %s5564_s30, %s5055_s4  ;;  %s4723_s10 = smov 96  }
 0x175   : > { %v4259_v32 = vpop.eup %4258  ;;  %1768 = vmatpush.bf16.msra.mxu0 %v3576_v58  ;;  %v3572_v8 = vor.u32 %v3998_v6, %v3571_v5  ;;  %v3551_v9 = vld [vmem:[%s5032_s3 + $0x60] sm:$0xf]  ;;  %v3994_v10 = vld [vmem:[%s5032_s3 + $0x68] sm:$0xf0]  ;;  %v3993_v11 = vld [vmem:[%s5032_s3 + $0x64] sm:$0xf] }
 0x176   : > { %v1546_v33 = vmul.f32 128.0, %v4259_v32  ;;  %vm1550_vm2 = vweird.f32 %v4259_v32  ;;  %1782 = vmatpush.bf16.msra.mxu1 %v3580_v62  ;;  %v3552_v12 = vor.u32 %v3994_v10, %v3551_v9  ;;  %v3553_v13 = vld [vmem:[%s5032_s3 + $0x6c] sm:$0xf0]  ;;  %v3559_v14 = vld [vmem:[%s5032_s3 + $0x68] sm:$0xf]  ;;  %vm1889_vm9 = vcmask 261120  }
 0x177   : > { %1796 = vmatpush.bf16.msra.mxu2 %v3584_v63  ;;  %v3995_v15 = vld [vmem:[%s5032_s3 + $0x70] sm:$0xf0]  ;;  %v3556_v16 = vor.u32 %v3993_v11, %v3553_v13  ;;  %v3539_v18 = vld [vmem:[%s5032_s3 + $0x48] sm:$0xf]  ;;  %v3990_v20 = vld [vmem:[%s5032_s3 + $0x4c] sm:$0xf] }
 0x178   : > { %v1547_v34 = vsub.f32 1.0, %v1546_v33  ;;  %v3560_v17 = vor.u32 %v3995_v15, %v3559_v14  ;;  %v3991_v19 = vld [vmem:[%s5032_s3 + $0x50] sm:$0xf0]  ;;  %v3541_v22 = vld [vmem:[%s5032_s3 + $0x54] sm:$0xf0]  ;;  %vm1943_vm10 = vcmask 523264  }
 0x179   : > { %1769 = vmatpush.bf16.msra.mxu0 %v3564_v3  ;;  %v3540_v21 = vor.u32 %v3991_v19, %v3539_v18  ;;  %v3547_v23 = vld [vmem:[%s5032_s3 + $0x50] sm:$0xf]  ;;  %v3992_v24 = vld [vmem:[%s5032_s3 + $0x58] sm:$0xf0]  ;;  %v3544_v25 = vor.u32 %v3990_v20, %v3541_v22  ;;  %v3987_v31 = vld [vmem:[%s5032_s3 + $0x34] sm:$0xf] }
 0x17a   : > { %v1548_v35 = vmul.f32 %v4259_v32, %v1547_v34  ;;  %1783 = vmatpush.bf16.msra.mxu1 %v3568_v7  ;;  %v3548_v26 = vor.u32 %v3992_v24, %v3547_v23  ;;  %v3527_v27 = vld [vmem:[%s5032_s3 + $0x30] sm:$0xf]  ;;  %v3988_v28 = vld [vmem:[%s5032_s3 + $0x38] sm:$0xf0]  ;;  %v3529_v33 = vld [vmem:[%s5032_s3 + $0x3c] sm:$0xf0] }
 0x17b   : > { %1797 = vmatpush.bf16.msra.mxu2 %v3572_v8  ;;  %v3535_v34 = vld [vmem:[%s5032_s3 + $0x38] sm:$0xf]  ;;  %v3523_v46 = vld [vmem:[%s5032_s3 + $0x20] sm:$0xf]  ;;  %v3986_v47 = vld [vmem:[%s5032_s3 + $0x28] sm:$0xf0] }
 0x17c   : > { %1543 = vadd.xlane.f32.xlu0 %v5118_v30  ;;  %v1549_v36 = vadd.f32 %v4259_v32, %v1548_v35  ;;  %v3989_v35 = vld [vmem:[%s5032_s3 + $0x40] sm:$0xf0]  ;;  %v3524_v49 = vor.u32 %v3986_v47, %v3523_v46  ;;  %v3503_v50 = vld [vmem:[%s5032_s3] sm:$0xf]  ;;  %v3982_v51 = vld [vmem:[%s5032_s3 + $0x8] sm:$0xf0] }
 0x17d   : > { %1770 = vmatpush.bf16.msra.mxu0 %v3552_v12  ;;  %v3981_v52 = vld [vmem:[%s5032_s3 + $0x4] sm:$0xf]  ;;  %v3504_v54 = vor.u32 %v3982_v51, %v3503_v50  ;;  %v3505_v55 = vld [vmem:[%s5032_s3 + $0xc] sm:$0xf0]  ;;  %v3511_v56 = vld [vmem:[%s5032_s3 + $0x8] sm:$0xf] }
 0x17e   : > { %v5121_v37 = vsel %vm1550_vm2, %v4259_v32, %v1549_v36  ;;  %1784 = vmatpush.bf16.msra.mxu1 %v3556_v16  ;;  %v3528_v32 = vor.u32 %v3988_v28, %v3527_v27  ;;  %v3532_v36 = vor.u32 %v3987_v31, %v3529_v33  ;;  %v3983_v57 = vld [vmem:[%s5032_s3 + $0x10] sm:$0xf0]  ;;  %v3508_v59 = vor.u32 %v3981_v52, %v3505_v55  ;;  %v4252_v14 = vld [vmem:[%s5565_s26] ss:$0 sm:$0xff]  ;;  %s5569_s4 = scalar_lea.vmem [#allocation12], %s5029_s27  ;;  %p3893_p1 = scmp.ne.s32.totalorder %s4865_s5, 1 }
 0x17f   : > { %1798 = vmatpush.bf16.msra.mxu2 %v3560_v17  ;;  %v3512_v60 = vor.u32 %v3983_v57, %v3511_v56  ;;  %v4253_v19 = vld [vmem:[%s5566_s13] ss:$0 sm:$0xff]  ;;  %vm2091_vm11 = vcmask 785408  }
 0x180   : > { %v5198_v23 = vld [vmem:[%s5079_s14] sm:$0x7]  ;;  %s4724_s14 = smov 32  }
 0x181   : > { %1771 = vmatpush.bf16.msra.mxu0 %v3540_v21  ;;  %v1634_v24 = vperm.slane %v5198_v23, 1  ;;  %v1633_v27 = vperm.slane %v5198_v23, 0 }
 0x182   : > { %1785 = vmatpush.bf16.msra.mxu1 %v3544_v25 }
 0x183   : > { %1799 = vmatpush.bf16.msra.mxu2 %v3548_v26 }
 0x185   : > { %1772 = vmatpush.bf16.msra.mxu0 %v3528_v32 }
 0x186   : > { %1786 = vmatpush.bf16.msra.mxu1 %v3532_v36 }
 0x1e7   : > { %v1542_v38 = vpop.xlane.xlu0 %1541 }
 0x1e8   : > { %v1552_v39 = vmul.f32 %v5121_v37, %v1542_v38  ;;  %v3536_v38 = vor.u32 %v3989_v35, %v3535_v34 }
 0x1ea   : > { %v5125_v40 = vsub.f32 %v5115_v29, %v1552_v39  ;;  %1800 = vmatpush.bf16.msra.mxu2 %v3536_v38  ;;  %v3515_v39 = vld [vmem:[%s5032_s3 + $0x18] sm:$0xf] }
 0x1ec   : > { %v1556_v41 = vmul.f32 %v5125_v40, %v5125_v40 }
 0x1ee   : > { %1558 = vadd.xlane.f32.xlu1 %v1556_v41  ;;  %v3985_v41 = vld [vmem:[%s5032_s3 + $0x20] sm:$0xf0]  ;;  %1801 = vmatpush.bf16.msra.mxu2 %v3524_v49 }
 0x1ef   : > { %v1544_v42 = vpop.xlane.xlu0 %1543 }
 0x1f0   : > { %v1553_v43 = vmul.f32 %v5121_v37, %v1544_v42  ;;  %v3984_v42 = vld [vmem:[%s5032_s3 + $0x1c] sm:$0xf] }
 0x1f2   : > { %v5131_v44 = vsub.f32 %v5118_v30, %v1553_v43  ;;  %v3516_v43 = vor.u32 %v3985_v41, %v3515_v39  ;;  %1802 = vmatpush.bf16.msra.mxu2 %v3512_v60 }
 0x1f4   : > { %v1557_v45 = vmul.f32 %v5131_v44, %v5131_v44  ;;  %1773 = vmatpush.bf16.msra.mxu0 %v3516_v43 }
 0x1f6   : > { %1560 = vadd.xlane.f32.xlu1 %v1557_v45  ;;  %v3517_v45 = vld [vmem:[%s5032_s3 + $0x24] sm:$0xf0] }
 0x1f7   : > { %v3520_v48 = vor.u32 %v3984_v42, %v3517_v45 }
 0x1f8   : > { %1774 = vmatpush.bf16.msra.mxu0 %v3504_v54 }
 0x1f9   : > { %1787 = vmatpush.bf16.msra.mxu1 %v3520_v48 }
 0x1fd   : > { %1788 = vmatpush.bf16.msra.mxu1 %v3508_v59 }
 0x261   : > { %v1559_v53 = vpop.xlane.xlu1 %1558 }
 0x262   : > { %v1562_v58 = vmul.f32 %v1559_v53, %v5121_v37 }
 0x264   : > { %v1564_v61 = vadd.f32 1e-06, %v1562_v58 }
 0x266   : > { %4260 = vrsqrt.f32 %v1564_v61  ;;  %vm1572_vm4 = vweird.f32 %v1564_v61 }
 0x269   : > { %v1561_v62 = vpop.xlane.xlu1 %1560 }
 0x26a   : > { %v1563_v63 = vmul.f32 %v1561_v62, %v5121_v37  ;;  %v1881_v62 = vld [vmem:[#allocation8] sm:$0xff] }
 0x26c   : > { %v4261_v0 = vpop.eup %4260  ;;  %v1565_v1 = vadd.f32 1e-06, %v1563_v63 }
 0x26d   : > { %v1567_v2 = vmul.f32 %v4261_v0, %v1564_v61  ;;  %vm1573_vm3 = vweird.f32 %v4261_v0 }
 0x26e   : > { %4262 = vrsqrt.f32 %v1565_v1  ;;  %vm1574_vm5 = vmor %vm1572_vm4, %vm1573_vm3  ;;  %vm1582_vm7 = vweird.f32 %v1565_v1 }
 0x26f   : > { %v1568_v3 = vmul.f32 %v4261_v0, %v1567_v2  ;;  %v1882_v2 = vld [vmem:[#allocation8 + $0x8] sm:$0xff] }
 0x271   : > { %v1569_v4 = vmul.f32 0.5, %v1568_v3 }
 0x273   : > { %v1570_v5 = vsub.f32 1.5, %v1569_v4 }
 0x274   : > { %v4263_v6 = vpop.eup %4262 }
 0x275   : > { %v1571_v7 = vmul.f32 %v4261_v0, %v1570_v5  ;;  %v1577_v8 = vmul.f32 %v4263_v6, %v1565_v1  ;;  %vm1583_vm6 = vweird.f32 %v4263_v6 }
 0x276   : > { %vm1584_vm8 = vmor %vm1582_vm7, %vm1583_vm6 }
 0x277   : > { %v1578_v9 = vmul.f32 %v4263_v6, %v1577_v8  ;;  %v1575_v10 = vsel %vm1574_vm5, %v4261_v0, %v1571_v7 }
 0x278   : > { %v1586_v13 = vmul.f32 %v1575_v10, %v5125_v40  ;;  %v1884_v10 = vld [vmem:[#allocation8 + $0x18] sm:$0xff] }
 0x279   : > { %v1579_v11 = vmul.f32 0.5, %v1578_v9 }
 0x27a   : > { %v1591_v18 = vmul.f32 %v4252_v14, %v1586_v13 }
 0x27b   : > { %v1580_v12 = vsub.f32 1.5, %v1579_v11 }
 0x27c   : > { %v1596_v40 = vadd.f32 %v4253_v19, %v1591_v18 }
 0x27d   : > { %v1581_v15 = vmul.f32 %v4263_v6, %v1580_v12 }
 0x27f   : > { %v1585_v16 = vsel %vm1584_vm8, %v4263_v6, %v1581_v15  ;;  %v1883_v6 = vld [vmem:[#allocation8 + $0x10] sm:$0xff] }
 0x280   : > { %v1587_v17 = vmul.f32 %v1585_v16, %v5131_v44 }
 0x282   : > { %v1592_v20 = vmul.f32 %v4252_v14, %v1587_v17  ;;  %v1885_v14 = vld [vmem:[#allocation8 + $0x20] sm:$0xff] }
 0x284   : > { %v1597_v21 = vadd.f32 %v4253_v19, %v1592_v20  ;;  %v1886_v19 = vld [vmem:[#allocation8 + $0x28] sm:$0xff] }
 0x286   : > { %v1598_v22 = vpack.c.bf16 %v1597_v21, %v1596_v40 }
 0x288   : > { %1775 = vmatmul.bf16.vlgmr.msra.gmra.mxu0 %v1598_v22  ;;  %1789 = vmatmul.bf16.vlgmr.msra.gmra.mxu1 %v1598_v22 }
 0x289   : > { %1803 = vmatmul.bf16.vlgmr.msra.gmra.mxu2 %v1598_v22 }
 0x305   : > { %v1776_v25 = vpop.f32.mrf.mxu0  ;;  %v1790_v26 = vpop.f32.mrf.mxu1 }
 0x306   : > { %v1791_v44 = vadd.f32 %v1790_v26, %v1634_v24  ;;  %v1777_v34 = vadd.f32 %v1776_v25, %v1633_v27  ;;  %v1887_v25 = vld [vmem:[#allocation8 + $0x30] sm:$0xff] }
 0x308   : > { %1837 = vrot.lane.b32.xlu1 %v1791_v44, %s4722_s1 }
 0x30c   : > { %v1804_v17 = vpop.f32.mrf.mxu2 }
 0x30d   : > { %v1778_v28 = vpop.f32.mrf.mxu0  ;;  %v1792_v31 = vpop.f32.mrf.mxu1 }
 0x30e   : > { %v1779_v32 = vadd.f32 %v1778_v28, %v1633_v27  ;;  %v1793_v33 = vadd.f32 %v1792_v31, %v1634_v24  ;;  %v1635_v24 = vperm.slane %v5198_v23, 2 }
 0x310   : > { %1844 = vrot.lane.b32.xlu0 %v1793_v33, %s4723_s10  ;;  %1847 = vrot.lane.b32.xlu2 %v1793_v33, %s4722_s1  ;;  %v5231_v27 = vadd.f32 %v1804_v17, %v1635_v24 }
 0x311   : > { %1820 = vrot.lane.b32.xlu1 %v1779_v32, %s4723_s10 }
 0x314   : > { %v1806_v22 = vpop.f32.mrf.mxu2 }
 0x315   : > { %v5229_v26 = vadd.f32 %v1806_v22, %v1635_v24 }
 0x318   : > { %1850 = vrot.lane.b32.xlu2 %v1793_v33, %s4724_s14  ;;  %1813 = vrot.lane.b32.xlu0 %v1777_v34, %s4722_s1 }
 0x320   : > { %1840 = vrot.lane.b32.xlu2 %v1791_v44, %s4724_s14  ;;  %1823 = vrot.lane.b32.xlu0 %v1779_v32, %s4722_s1 }
 0x328   : > { %1834 = vrot.lane.b32.xlu2 %v1791_v44, %s4723_s10 }
 0x330   : > { %1810 = vrot.lane.b32.xlu2 %v1777_v34, %s4723_s10 }
 0x338   : > { %1816 = vrot.lane.b32.xlu2 %v1777_v34, %s4724_s14 }
 0x340   : > { %1826 = vrot.lane.b32.xlu2 %v1779_v32, %s4724_s14 }
 0x36a   : > { %v1848_v35 = vpop.permute.xlu2 %1847 }
 0x372   : > { %v1851_v36 = vpop.permute.xlu2 %1850 }
 0x373   : > { %v1856_v38 = vpack.c.bf16 %v1851_v36, %v1848_v35 }
 0x375   : > { %v1912_v39 = vsel %vm1889_vm9, %v1856_v38, 0 }
 0x376   : > { %1918 = vmatpush.bf16.xpose.msra.mxu3 %v1912_v39 }
 0x37a   : > { %v1841_v43 = vpop.permute.xlu2 %1840  ;;  %v1838_v46 = vpop.permute.xlu1 %1837 }
 0x37b   : > { %v1854_v47 = vpack.c.bf16 %v1841_v43, %v1838_v46 }
 0x37d   : > { %v1906_v48 = vsel %vm1889_vm9, %v1854_v47, 0 }
 0x382   : > { %v1845_v41 = vpop.permute.xlu0 %1844  ;;  %v1835_v49 = vpop.permute.xlu2 %1834 }
 0x383   : > { %v1855_v42 = vpack.c.bf16 %v1845_v41, %v1793_v33  ;;  %v1853_v50 = vpack.c.bf16 %v1835_v49, %v1791_v44  ;;  %v1821_v57 = vpop.permute.xlu1 %1820  ;;  %v1888_v33 = vld [vmem:[#allocation8 + $0x38] sm:$0xff] }
 0x384   : > { %v1831_v58 = vpack.c.bf16 %v1821_v57, %v1779_v32  ;;  %v4222_v32 = vpack.i.bf16 %v5231_v27, %v5229_v26 }
 0x385   : > { %v1909_v45 = vsel %vm1889_vm9, %v1855_v42, 0  ;;  %v1903_v51 = vsel %vm1889_vm9, %v1853_v50, 0 }
 0x386   : > { %1919 = vmatpush.bf16.xpose.msra.mxu3 %v1909_v45 }
 0x38a   : > { %v1811_v52 = vpop.permute.xlu2 %1810  ;;  %v1814_v55 = vpop.permute.xlu0 %1813 }
 0x38b   : > { %v1829_v53 = vpack.c.bf16 %v1811_v52, %v1777_v34 }
 0x38e   : > { %1920 = vmatpush.bf16.xpose.msra.mxu3 %v1906_v48 }
 0x392   : > { %v1817_v54 = vpop.permute.xlu2 %1816  ;;  %v1824_v60 = vpop.permute.xlu0 %1823 }
 0x393   : > { %v1830_v56 = vpack.c.bf16 %v1817_v54, %v1814_v55 }
 0x396   : > { %1921 = vmatpush.bf16.xpose.msra.mxu3 %v1903_v51 }
 0x39a   : > { %v1827_v59 = vpop.permute.xlu2 %1826 }
 0x39b   : > { %v1832_v61 = vpack.c.bf16 %v1827_v59, %v1824_v60 }
 0x39d   : > { %3597 = vmatmul.msk.bf16.vlgmr.msra.gmra.mxu3 %vm1889_vm9, %v1829_v53 }
 0x3ad   : > { %3598 = vmatmul.msk.bf16.gmra.mxu3 %vm1889_vm9, %v1830_v56 }
 0x3bd   : > { %3599 = vmatmul.msk.bf16.gmra.mxu3 %vm1889_vm9, %v1831_v58 }
 0x3cd   : > { %3600 = vmatmul.msk.bf16.gmra.mxu3 %vm1889_vm9, %v1832_v61 }
 0x420   : > { %v1923_v63 = vpop.f32.mrf.mxu3 }
 0x421   : > { %v1924_v0 = vadd.f32 %v1923_v63, %v1881_v62 }
 0x423   : > { %v1944_v1 = vsel %vm1943_vm10, %v1924_v0, -inf }
 0x424   : > { %1945 = vmax.xlane.f32.xlu1 %v1944_v1 }
 0x428   : > { %v1925_v3 = vpop.f32.mrf.mxu3 }
 0x429   : > { %v1926_v4 = vadd.f32 %v1925_v3, %v1882_v2 }
 0x42b   : > { %v1947_v5 = vsel %vm1943_vm10, %v1926_v4, -inf }
 0x42c   : > { %1948 = vmax.xlane.f32.xlu0 %v1947_v5 }
 0x430   : > { %v1928_v7 = vpop.f32.mrf.mxu3 }
 0x431   : > { %v1929_v8 = vadd.f32 %v1928_v7, %v1883_v6 }
 0x433   : > { %v1950_v9 = vsel %vm1943_vm10, %v1929_v8, -inf }
 0x434   : > { %1951 = vmax.xlane.f32.xlu2 %v1950_v9 }
 0x438   : > { %v1930_v11 = vpop.f32.mrf.mxu3 }
 0x439   : > { %v1931_v12 = vadd.f32 %v1930_v11, %v1884_v10 }
 0x43b   : > { %v1953_v13 = vsel %vm1943_vm10, %v1931_v12, -inf }
 0x43c   : > { %1954 = vmax.xlane.f32.xlu1 %v1953_v13 }
 0x440   : > { %v1933_v15 = vpop.f32.mrf.mxu3 }
 0x441   : > { %v1934_v16 = vadd.f32 %v1933_v15, %v1885_v14 }
 0x443   : > { %v1956_v18 = vsel %vm1943_vm10, %v1934_v16, -inf }
 0x444   : > { %1957 = vmax.xlane.f32.xlu0 %v1956_v18 }
 0x448   : > { %v1935_v20 = vpop.f32.mrf.mxu3 }
 0x449   : > { %v1936_v40 = vadd.f32 %v1935_v20, %v1886_v19 }
 0x44b   : > { %v1959_v21 = vsel %vm1943_vm10, %v1936_v40, -inf }
 0x44c   : > { %1960 = vmax.xlane.f32.xlu2 %v1959_v21 }
 0x450   : > { %v1938_v44 = vpop.f32.mrf.mxu3 }
 0x451   : > { %v1939_v28 = vadd.f32 %v1938_v44, %v1887_v25 }
 0x453   : > { %v1962_v31 = vsel %vm1943_vm10, %v1939_v28, -inf }
 0x454   : > { %1963 = vmax.xlane.f32.xlu2 %v1962_v31 }
 0x455   : > { %4223 = vrot.lane.b32.xlu1 %v4222_v32, %s4722_s1 }
 0x458   : > { %4228 = vrot.lane.b32.xlu0 %v4222_v32, %s4724_s14  ;;  %v1940_v34 = vpop.f32.mrf.mxu3 }
 0x459   : > { %v1941_v23 = vadd.f32 %v1940_v34, %v1888_v33 }
 0x45b   : > { %v1965_v35 = vsel %vm1943_vm10, %v1941_v23, -inf }
 0x45c   : > { %1966 = vmax.xlane.f32.xlu2 %v1965_v35 }
 0x474   : > { %4233 = vrot.lane.b32.xlu2 %v4222_v32, %s4723_s10 }
 0x497   : > { %v1946_v36 = vpop.xlane.xlu1 %1945 }
 0x498   : > { %v1968_v38 = vsub.f32 %v1924_v0, %v1946_v36 }
 0x49a   : > { %v1976_v39 = vmul.f32 1.442695, %v1968_v38 }
 0x49c   : > { %4264 = vpow2.f32 %v1976_v39 }
 0x49f   : > { %v1949_v41 = vpop.xlane.xlu0 %1948 }
 0x4a0   : > { %v1969_v42 = vsub.f32 %v1926_v4, %v1949_v41 }
 0x4a2   : > { %v5240_v43 = vpop.eup %4264  ;;  %v1978_v45 = vmul.f32 1.442695, %v1969_v42 }
 0x4a3   : > { %v1992_v46 = vsel %vm1943_vm10, %v5240_v43, 0.0 }
 0x4a4   : > { %4266 = vpow2.f32 %v1978_v45  ;;  %1993 = vadd.xlane.f32.xlu0 %v1992_v46 }
 0x4a7   : > { %v1952_v47 = vpop.xlane.xlu2 %1951 }
 0x4a8   : > { %v1970_v48 = vsub.f32 %v1929_v8, %v1952_v47 }
 0x4aa   : > { %v5244_v49 = vpop.eup %4266  ;;  %v1980_v50 = vmul.f32 1.442695, %v1970_v48 }
 0x4ab   : > { %v1995_v51 = vsel %vm1943_vm10, %v5244_v49, 0.0 }
 0x4ac   : > { %4268 = vpow2.f32 %v1980_v50  ;;  %1996 = vadd.xlane.f32.xlu1 %v1995_v51 }
 0x4af   : > { %v1955_v52 = vpop.xlane.xlu1 %1954 }
 0x4b0   : > { %v1971_v53 = vsub.f32 %v1931_v12, %v1955_v52 }
 0x4b2   : > { %v5248_v54 = vpop.eup %4268  ;;  %v1982_v55 = vmul.f32 1.442695, %v1971_v53 }
 0x4b3   : > { %v1998_v56 = vsel %vm1943_vm10, %v5248_v54, 0.0 }
 0x4b4   : > { %4270 = vpow2.f32 %v1982_v55  ;;  %1999 = vadd.xlane.f32.xlu2 %v1998_v56 }
 0x4b7   : > { %v1958_v57 = vpop.xlane.xlu0 %1957 }
 0x4b8   : > { %v1972_v58 = vsub.f32 %v1934_v16, %v1958_v57 }
 0x4ba   : > { %v5252_v59 = vpop.eup %4270  ;;  %v1984_v60 = vmul.f32 1.442695, %v1972_v58 }
 0x4bb   : > { %v2001_v61 = vsel %vm1943_vm10, %v5252_v59, 0.0 }
 0x4bc   : > { %4272 = vpow2.f32 %v1984_v60  ;;  %2002 = vadd.xlane.f32.xlu0 %v2001_v61 }
 0x4bf   : > { %v1961_v62 = vpop.xlane.xlu2 %1960 }
 0x4c0   : > { %v1973_v63 = vsub.f32 %v1936_v40, %v1961_v62 }
 0x4c2   : > { %v5256_v0 = vpop.eup %4272  ;;  %v1986_v1 = vmul.f32 1.442695, %v1973_v63 }
 0x4c3   : > { %v2004_v2 = vsel %vm1943_vm10, %v5256_v0, 0.0 }
 0x4c4   : > { %4274 = vpow2.f32 %v1986_v1  ;;  %2005 = vadd.xlane.f32.xlu1 %v2004_v2 }
 0x4c7   : > { %v1964_v3 = vpop.xlane.xlu2 %1963  ;;  %v4224_v4 = vpop.permute.xlu1 %4223 }
 0x4c8   : > { %v1974_v5 = vsub.f32 %v1939_v28, %v1964_v3  ;;  %v4225_v9 = vunpack.i.l.bf16 %v4224_v4  ;;  %v4226_v24 = vunpack.i.h.bf16 %v4224_v4 }
 0x4ca   : > { %v4275_v6 = vpop.eup %4274  ;;  %v1988_v7 = vmul.f32 1.442695, %v1974_v5  ;;  %v4229_v8 = vpop.permute.xlu0 %4228 }
 0x4cb   : > { %v4230_v10 = vunpack.i.l.bf16 %v4229_v8  ;;  %v2007_v11 = vsel %vm1943_vm10, %v4275_v6, 0.0  ;;  %v4231_v40 = vunpack.i.h.bf16 %v4229_v8  ;;  %v4010_v8 = vld [vmem:[%s5070_s23 + $0x28] sm:$0xff] }
 0x4cc   : > { %4276 = vpow2.f32 %v1988_v7  ;;  %2008 = vadd.xlane.f32.xlu0 %v2007_v11  ;;  %v4011_v7 = vld [vmem:[%s5070_s23 + $0x30] sm:$0xff] }
 0x4cd   : > { %v1880_v12 = vpack.c.bf16 %v4230_v10, %v4225_v9  ;;  %v1878_v44 = vpack.c.bf16 %v4231_v40, %v4226_v24  ;;  %v4009_v9 = vld [vmem:[%s5070_s23 + $0x20] sm:$0xff]  ;;  %v4008_v10 = vld [vmem:[%s5070_s23 + $0x18] sm:$0xff]  ;;  %v4007_v11 = vld [vmem:[%s5070_s23 + $0x10] sm:$0xff] }
 0x4cf   : > { %2052 = vmatpush.bf16.msrb.mxu0 %v1880_v12  ;;  %v1967_v13 = vpop.xlane.xlu2 %1966  ;;  %v4006_v12 = vld [vmem:[%s5070_s23 + $0x8] sm:$0xff] }
 0x4d0   : > { %v1975_v14 = vsub.f32 %v1941_v23, %v1967_v13  ;;  %v4005_v13 = vld [vmem:[%s5070_s23] sm:$0xff] }
 0x4d2   : > { %v4277_v15 = vpop.eup %4276  ;;  %v1990_v16 = vmul.f32 1.442695, %v1975_v14 }
 0x4d3   : > { %v2010_v17 = vsel %vm1943_vm10, %v4277_v15, 0.0 }
 0x4d4   : > { %4278 = vpow2.f32 %v1990_v16  ;;  %2011 = vadd.xlane.f32.xlu1 %v2010_v17 }
 0x4d7   : > { %v4234_v18 = vpop.permute.xlu2 %4233 }
 0x4d8   : > { %v4235_v19 = vunpack.i.l.bf16 %v4234_v18  ;;  %v4236_v25 = vunpack.i.h.bf16 %v4234_v18 }
 0x4da   : > { %v4279_v20 = vpop.eup %4278  ;;  %v1879_v21 = vpack.c.bf16 %v4235_v19, %v5229_v26  ;;  %v1877_v28 = vpack.c.bf16 %v4236_v25, %v5231_v27 }
 0x4db   : > { %v2013_v22 = vsel %vm1943_vm10, %v4279_v20, 0.0 }
 0x4dc   : > { %2014 = vadd.xlane.f32.xlu0 %v2013_v22  ;;  %2053 = vmatpush.bf16.msrb.mxu0 %v1879_v21 }
 0x4e0   : > { %2054 = vmatpush.bf16.msrb.mxu0 %v1878_v44 }
 0x4e4   : > { %2055 = vmatpush.bf16.msrb.mxu0 %v1877_v28 }
 0x517   : > { %v1994_v31 = vpop.xlane.xlu0 %1993 }
 0x518   : > { %4280 = vrcp.f32 %v1994_v31 }
 0x51e   : > { %v4281_v33 = vpop.eup %4280 }
 0x51f   : > { %v1997_v32 = vpop.xlane.xlu1 %1996  ;;  %v2024_v23 = vmul.f32 %v4281_v33, %v5240_v43  ;;  %v4254_v33 = vld [vmem:[%s1006_s2] ss:$0 sm:$0xff]  ;;  %s5570_s2 = scalar_lea.vmem [#allocation14], %s5029_s27 }
 0x520   : > { %4282 = vrcp.f32 %v1997_v32 }
 0x526   : > { %v4283_v34 = vpop.eup %4282 }
 0x527   : > { %v2025_v26 = vmul.f32 %v4283_v34, %v5244_v49  ;;  %v2000_v36 = vpop.xlane.xlu2 %1999  ;;  %v2112_v34 = vadd.f32 %v4254_v33, %v5115_v29 }
 0x528   : > { %4284 = vrcp.f32 %v2000_v36 }
 0x529   : > { %v2032_v35 = vpack.c.bf16 %v2025_v26, %v2024_v23 }
 0x52b   : > { %3601 = vmatmul.msk.bf16.vlgmr.msrb.gmra.mxu0 %vm1943_vm10, %v2032_v35  ;;  %v2113_v35 = vadd.f32 %v4254_v33, %v5118_v30  ;;  %v4025_v33 = vld [vmem:[%s5085_s11 + $0x64] sm:$0xf] }
 0x52e   : > { %v4285_v39 = vpop.eup %4284 }
 0x52f   : > { %v2003_v38 = vpop.xlane.xlu0 %2002  ;;  %v2026_v41 = vmul.f32 %v4285_v39, %v5248_v54  ;;  %v4042_v39 = vld [vmem:[%s5085_s11 + $0xec] sm:$0xf] }
 0x530   : > { %4286 = vrcp.f32 %v2003_v38 }
 0x536   : > { %v4287_v27 = vpop.eup %4286 }
 0x537   : > { %v2027_v42 = vmul.f32 %v4287_v27, %v5252_v59  ;;  %v2006_v46 = vpop.xlane.xlu1 %2005  ;;  %v3761_v27 = vld [vmem:[%s5085_s11 + $0xf8] sm:$0xf0] }
 0x538   : > { %4288 = vrcp.f32 %v2006_v46  ;;  %v3735_v46 = vld [vmem:[%s5085_s11 + $0xc0] sm:$0xf] }
 0x539   : > { %v2033_v45 = vpack.c.bf16 %v2027_v42, %v2026_v41  ;;  %v3751_v41 = vld [vmem:[%s5085_s11 + $0xe0] sm:$0xf]  ;;  %v3764_v42 = vor.u32 %v4042_v39, %v3761_v27  ;;  %v4026_v39 = vld [vmem:[%s5085_s11 + $0x6c] sm:$0xf]  ;;  %v3697_v27 = vld [vmem:[%s5085_s11 + $0x78] sm:$0xf0] }
 0x53b   : > { %3602 = vmatmul.msk.bf16.gmra.mxu0 %vm1943_vm10, %v2033_v45  ;;  %v4043_v45 = vld [vmem:[%s5085_s11 + $0xec] sm:$0xf0]  ;;  %2492 = vmatpush.bf16.msrb.mxu3 %v3764_v42  ;;  %v3700_v42 = vor.u32 %v4026_v39, %v3697_v27 }
 0x53c   : > { %v3752_v29 = vor.u32 %v4043_v45, %v3751_v41  ;;  %v4021_v45 = vld [vmem:[%s5085_s11 + $0x44] sm:$0xf] }
 0x53e   : > { %v4289_v47 = vpop.eup %4288  ;;  %2450 = vmatpush.bf16.msrb.mxu2 %v3752_v29 }
 0x53f   : > { %v2009_v43 = vpop.xlane.xlu0 %2008  ;;  %v2028_v49 = vmul.f32 %v4289_v47, %v5256_v0 }
 0x540   : > { %4290 = vrcp.f32 %v2009_v43  ;;  %v4039_v43 = vld [vmem:[%s5085_s11 + $0xcc] sm:$0xf0] }
 0x541   : > { %v3736_v47 = vor.u32 %v4039_v43, %v3735_v46  ;;  %v3673_v46 = vld [vmem:[%s5085_s11 + $0x50] sm:$0xf0]  ;;  %v3743_v43 = vld [vmem:[%s5085_s11 + $0xc8] sm:$0xf] }
 0x542   : > { %v3676_v29 = vor.u32 %v4021_v45, %v3673_v46 }
 0x543   : > { %2451 = vmatpush.bf16.msrb.mxu2 %v3736_v47  ;;  %v4040_v47 = vld [vmem:[%s5085_s11 + $0xd4] sm:$0xf0] }
 0x546   : > { %v4291_v48 = vpop.eup %4290 }
 0x547   : > { %v2029_v50 = vmul.f32 %v4291_v48, %v4275_v6  ;;  %v2012_v52 = vpop.xlane.xlu1 %2011  ;;  %v4012_v6 = vld [vmem:[%s5070_s23 + $0x38] sm:$0xff] }
 0x548   : > { %4292 = vrcp.f32 %v2012_v52  ;;  %2179 = vmatpush.bf16.msrb.mxu1 %v4012_v6 }
 0x549   : > { %v2034_v51 = vpack.c.bf16 %v2029_v50, %v2028_v49 }
 0x54b   : > { %3603 = vmatmul.msk.bf16.gmra.mxu0 %vm1943_vm10, %v2034_v51 }
 0x54c   : > { %2180 = vmatpush.bf16.msrb.mxu1 %v4011_v7  ;;  %v3737_v7 = vld [vmem:[%s5085_s11 + $0xd0] sm:$0xf0] }
 0x54e   : > { %v4293_v54 = vpop.eup %4292 }
 0x54f   : > { %v2015_v53 = vpop.xlane.xlu0 %2014  ;;  %v2030_v56 = vmul.f32 %v4293_v54, %v4277_v15 }
 0x550   : > { %4294 = vrcp.f32 %v2015_v53  ;;  %2181 = vmatpush.bf16.msrb.mxu1 %v4010_v8 }
 0x554   : > { %2182 = vmatpush.bf16.msrb.mxu1 %v4009_v9  ;;  %v3671_v9 = vld [vmem:[%s5085_s11 + $0x40] sm:$0xf] }
 0x556   : > { %v4295_v55 = vpop.eup %4294 }
 0x557   : > { %v2031_v57 = vmul.f32 %v4295_v55, %v4279_v20  ;;  %v3719_v55 = vld [vmem:[%s5085_s11 + $0xa0] sm:$0xf] }
 0x558   : > { %2183 = vmatpush.bf16.msrb.mxu1 %v4008_v10  ;;  %v4023_v10 = vld [vmem:[%s5085_s11 + $0x4c] sm:$0xf0] }
 0x559   : > { %v2035_v58 = vpack.c.bf16 %v2031_v57, %v2030_v56  ;;  %v4035_v56 = vld [vmem:[%s5085_s11 + $0xac] sm:$0xf0] }
 0x55a   : > { %v3720_v57 = vor.u32 %v4035_v56, %v3719_v55  ;;  %v3727_v55 = vld [vmem:[%s5085_s11 + $0xa8] sm:$0xf] }
 0x55b   : > { %3604 = vmatmul.msk.bf16.gmra.mxu0 %vm1943_vm10, %v2035_v58  ;;  %v3703_v58 = vld [vmem:[%s5085_s11 + $0x80] sm:$0xf] }
 0x55c   : > { %2184 = vmatpush.bf16.msrb.mxu1 %v4007_v11  ;;  %2452 = vmatpush.bf16.msrb.mxu2 %v3720_v57  ;;  %v4034_v11 = vld [vmem:[%s5085_s11 + $0xac] sm:$0xf]  ;;  %v4036_v57 = vld [vmem:[%s5085_s11 + $0xb4] sm:$0xf0] }
 0x560   : > { %2185 = vmatpush.bf16.msrb.mxu1 %v4006_v12  ;;  %v3729_v12 = vld [vmem:[%s5085_s11 + $0xb8] sm:$0xf0] }
 0x564   : > { %2186 = vmatpush.bf16.msrb.mxu1 %v4005_v13  ;;  %v3672_v13 = vor.u32 %v4023_v10, %v3671_v9  ;;  %v3695_v10 = vld [vmem:[%s5085_s11 + $0x68] sm:$0xf] }
 0x5a8   : > { %v2057_v59 = vpop.f32.mrf.mxu0 }
 0x5b0   : > { %v2059_v60 = vpop.f32.mrf.mxu0 }
 0x5b8   : > { %v2062_v61 = vpop.f32.mrf.mxu0 }
 0x5c0   : > { %v2064_v62 = vpop.f32.mrf.mxu0 }
 0x5c8   : > { %v2067_v63 = vpop.f32.mrf.mxu0 }
 0x5d0   : > { %v2069_v0 = vpop.f32.mrf.mxu0 }
 0x5d1   : > { %v4237_v1 = vpack.i.bf16 %v2069_v0, %v2059_v60  ;;  %v3687_v0 = vld [vmem:[%s5085_s11 + $0x60] sm:$0xf] }
 0x5d3   : > { %4238 = vrot.lane.b32.xlu1 %v4237_v1, %s4724_s14  ;;  %v4027_v1 = vld [vmem:[%s5085_s11 + $0x6c] sm:$0xf0] }
 0x5d8   : > { %v2072_v2 = vpop.f32.mrf.mxu0 }
 0x5d9   : > { %v4242_v3 = vpack.i.bf16 %v2072_v2, %v2062_v61  ;;  %v4041_v61 = vld [vmem:[%s5085_s11 + $0xe4] sm:$0xf]  ;;  %v4038_v2 = vld [vmem:[%s5085_s11 + $0xcc] sm:$0xf] }
 0x5db   : > { %4243 = vrot.lane.b32.xlu2 %v4242_v3, %s4722_s1  ;;  %v3745_v3 = vld [vmem:[%s5085_s11 + $0xd8] sm:$0xf0] }
 0x5dc   : > { %v3748_v6 = vor.u32 %v4038_v2, %v3745_v3  ;;  %v4032_v3 = vld [vmem:[%s5085_s11 + $0x94] sm:$0xf0] }
 0x5de   : > { %2493 = vmatpush.bf16.msrb.mxu3 %v3748_v6 }
 0x5e0   : > { %v2074_v4 = vpop.f32.mrf.mxu0 }
 0x5e1   : > { %v4247_v5 = vpack.i.bf16 %v2074_v4, %v2064_v62  ;;  %v3753_v62 = vld [vmem:[%s5085_s11 + $0xf0] sm:$0xf0]  ;;  %v3688_v4 = vor.u32 %v4027_v1, %v3687_v0  ;;  %v3711_v1 = vld [vmem:[%s5085_s11 + $0x88] sm:$0xf] }
 0x5e2   : > { %v3641_v0 = vld [vmem:[%s5085_s11 + $0x10] sm:$0xf0] }
 0x5e3   : > { %4248 = vrot.lane.b32.xlu0 %v4247_v5, %s4723_s10  ;;  %v4037_v5 = vld [vmem:[%s5085_s11 + $0xc4] sm:$0xf] }
 0x5e4   : > { %v3740_v8 = vor.u32 %v4037_v5, %v3737_v7  ;;  %v3649_v5 = vld [vmem:[%s5085_s11 + $0x18] sm:$0xf0]  ;;  %v3712_v7 = vor.u32 %v4032_v3, %v3711_v1  ;;  %v5401_v1 = vld [vmem:[%s5091_s19] sm:$0xf] }
 0x5e5   : > { %v4068_v3 = vld [vmem:[%s5096_s24 + $0xb8] sm:$0xff] }
 0x635   : > { %v4244_v17 = vpop.permute.xlu2 %4243 }
 0x636   : > { %v4246_v20 = vunpack.i.h.bf16 %v4244_v17  ;;  %v4245_v40 = vunpack.i.l.bf16 %v4244_v17 }
 0x645   : > { %v4239_v14 = vpop.permute.xlu1 %4238 }
 0x646   : > { %v4241_v15 = vunpack.i.h.bf16 %v4239_v14  ;;  %v4240_v16 = vunpack.i.l.bf16 %v4239_v14  ;;  %v4033_v14 = vld [vmem:[%s5085_s11 + $0xa4] sm:$0xf] }
 0x648   : > { %v2105_v18 = vsel %vm1889_vm9, %v2067_v63, %v4241_v15  ;;  %v2089_v19 = vsel %vm1889_vm9, %v2057_v59, %v4240_v16  ;;  %v4031_v59 = vld [vmem:[%s5085_s11 + $0x8c] sm:$0xf0]  ;;  %v3756_v63 = vor.u32 %v4041_v61, %v3753_v62  ;;  %v3732_v15 = vor.u32 %v4034_v11, %v3729_v12  ;;  %v3721_v16 = vld [vmem:[%s5085_s11 + $0xb0] sm:$0xf0]  ;;  %v4028_v11 = vld [vmem:[%s5085_s11 + $0x74] sm:$0xf0] }
 0x649   : > { %v2090_v25 = vsel %vm1943_vm10, %v2089_v19, %v4245_v40  ;;  %v2106_v44 = vsel %vm1943_vm10, %v2105_v18, %v4246_v20  ;;  %v3704_v60 = vor.u32 %v4031_v59, %v3703_v58  ;;  %v3724_v17 = vor.u32 %v4033_v14, %v3721_v16  ;;  %v3655_v18 = vld [vmem:[%s5085_s11 + $0x20] sm:$0xf]  ;;  %v4019_v19 = vld [vmem:[%s5085_s11 + $0x2c] sm:$0xf0]  ;;  %v4030_v20 = vld [vmem:[%s5085_s11 + $0x8c] sm:$0xf] }
 0x64a   : > { %2464 = vmatpush.bf16.msra.mxu1 %v3756_v63  ;;  %2494 = vmatpush.bf16.msrb.mxu3 %v3732_v15  ;;  %v3713_v40 = vld [vmem:[%s5085_s11 + $0x98] sm:$0xf0]  ;;  %v4018_v58 = vld [vmem:[%s5085_s11 + $0x2c] sm:$0xf]  ;;  %v3728_v61 = vor.u32 %v4036_v57, %v3727_v55  ;;  %v4013_v63 = vld [vmem:[%s5085_s11 + $0x4] sm:$0xf]  ;;  %v3696_v12 = vor.u32 %v4028_v11, %v3695_v10 }
 0x64b   : > { %2453 = vmatpush.bf16.msrb.mxu2 %v3704_v60  ;;  %v3665_v59 = vld [vmem:[%s5085_s11 + $0x38] sm:$0xf0]  ;;  %v3644_v6 = vor.u32 %v4013_v63, %v3641_v0  ;;  %v3679_v14 = vld [vmem:[%s5085_s11 + $0x48] sm:$0xf]  ;;  %v4024_v15 = vld [vmem:[%s5085_s11 + $0x54] sm:$0xf0] }
 0x64c   : > { %v3668_v62 = vor.u32 %v4018_v58, %v3665_v59  ;;  %v4058_v55 = vld [vmem:[%s5096_s24 + $0x68] sm:$0xff]  ;;  %v4075_v57 = vld [vmem:[%s5096_s24 + $0xf0] sm:$0xff]  ;;  %v4057_v58 = vld [vmem:[%s5096_s24 + $0x60] sm:$0xff] }
 0x64d   : > { %v4050_v59 = vld [vmem:[%s5096_s24 + $0x28] sm:$0xff]  ;;  %v4073_v63 = vld [vmem:[%s5096_s24 + $0xe0] sm:$0xff]  ;;  %v4055_v0 = vld [vmem:[%s5096_s24 + $0x50] sm:$0xff] }
 0x64e   : > { %2465 = vmatpush.bf16.msra.mxu1 %v3740_v8  ;;  %v4053_v11 = vld [vmem:[%s5096_s24 + $0x40] sm:$0xff] }
 0x64f   : > { %2454 = vmatpush.bf16.msrb.mxu2 %v3688_v4  ;;  %v4014_v4 = vld [vmem:[%s5085_s11 + $0xc] sm:$0xf] }
 0x650   : > { %v3652_v9 = vor.u32 %v4014_v4, %v3649_v5  ;;  %v4072_v4 = vld [vmem:[%s5096_s24 + $0xd8] sm:$0xff]  ;;  %v4054_v5 = vld [vmem:[%s5096_s24 + $0x48] sm:$0xff] }
 0x652   : > { %2466 = vmatpush.bf16.msra.mxu1 %v3724_v17  ;;  %v3680_v17 = vor.u32 %v4024_v15, %v3679_v14  ;;  %v4066_v14 = vld [vmem:[%s5096_s24 + $0xa8] sm:$0xff] }
 0x653   : > { %2455 = vmatpush.bf16.msrb.mxu2 %v3672_v13  ;;  %v4070_v15 = vld [vmem:[%s5096_s24 + $0xc8] sm:$0xff] }
 0x655   : > { %v4249_v21 = vpop.permute.xlu0 %4248 }
 0x656   : > { %v4251_v22 = vunpack.i.h.bf16 %v4249_v21  ;;  %v4250_v24 = vunpack.i.l.bf16 %v4249_v21  ;;  %v3656_v21 = vor.u32 %v4019_v19, %v3655_v18 }
 0x658   : > { %v2092_v28 = vsel %vm2091_vm11, %v2090_v25, %v4250_v24  ;;  %v2107_v31 = vsel %vm2091_vm11, %v2106_v44, %v4251_v22  ;;  %v4029_v22 = vld [vmem:[%s5085_s11 + $0x84] sm:$0xf]  ;;  %v3716_v24 = vor.u32 %v4030_v20, %v3713_v40  ;;  %v3705_v25 = vld [vmem:[%s5085_s11 + $0x90] sm:$0xf0]  ;;  %2456 = vmatpush.bf16.msrb.mxu2 %v3656_v21  ;;  %v3663_v20 = vld [vmem:[%s5085_s11 + $0x28] sm:$0xf] }
 0x659   : > { %v2114_v32 = vpack.c.bf16 %v2107_v31, %v2092_v28  ;;  %v3708_v44 = vor.u32 %v4029_v22, %v3705_v25  ;;  %v3639_v28 = vld [vmem:[%s5085_s11] sm:$0xf]  ;;  %v4015_v31 = vld [vmem:[%s5085_s11 + $0xc] sm:$0xf0]  ;;  %v4020_v40 = vld [vmem:[%s5085_s11 + $0x34] sm:$0xf0] }
 0x65a   : > { %2495 = vmatpush.bf16.msrb.mxu3 %v3716_v24  ;;  %v3664_v24 = vor.u32 %v4020_v40, %v3663_v20  ;;  %v3647_v25 = vld [vmem:[%s5085_s11 + $0x8] sm:$0xf]  ;;  %v4045_v40 = vld [vmem:[%s5096_s24] sm:$0xff] }
 0x65b   : > { %2187 = vmatmul.bf16.vlgmr.msrb.gmra.mxu1 %v2114_v32  ;;  %v3640_v32 = vor.u32 %v4015_v31, %v3639_v28 }
 0x65c   : > { %2467 = vmatpush.bf16.msra.mxu1 %v3708_v44  ;;  %v4016_v44 = vld [vmem:[%s5085_s11 + $0x14] sm:$0xf0] }
 0x65d   : > { %2457 = vmatpush.bf16.msrb.mxu2 %v3640_v32  ;;  %v3648_v32 = vor.u32 %v4016_v44, %v3647_v25 }
 0x65e   : > { %2496 = vmatpush.bf16.msrb.mxu3 %v3700_v42 }
 0x6d8   : > { %v2188_v23 = vpop.f32.mrf.mxu1 }
 0x6d9   : > { %v5295_v26 = vadd.f32 %v2188_v23, %v2112_v34  ;;  %v3689_v34 = vld [vmem:[%s5085_s11 + $0x70] sm:$0xf0]  ;;  %v3759_v23 = vld [vmem:[%s5085_s11 + $0xe8] sm:$0xf] }
 0x6db   : > { %2197 = vadd.xlane.f32.xlu1 %v5295_v26 }
 0x6e0   : > { %v2190_v36 = vpop.f32.mrf.mxu1 }
 0x6e1   : > { %v5299_v38 = vadd.f32 %v2190_v36, %v2113_v35  ;;  %v3692_v35 = vor.u32 %v4025_v33, %v3689_v34  ;;  %v4044_v36 = vld [vmem:[%s5085_s11 + $0xf4] sm:$0xf0] }
 0x6e2   : > { %v3760_v41 = vor.u32 %v4044_v36, %v3759_v23  ;;  %v4052_v36 = vld [vmem:[%s5096_s24 + $0x38] sm:$0xff] }
 0x6e3   : > { %2199 = vadd.xlane.f32.xlu0 %v5299_v38  ;;  %2468 = vmatpush.bf16.msra.mxu1 %v3692_v35 }
 0x6e4   : > { %2478 = vmatpush.bf16.msra.mxu2 %v3760_v41  ;;  %2842 = vmatpush.bf16.msra.mxu0 %v4052_v36 }
 0x6e7   : > { %2469 = vmatpush.bf16.msra.mxu1 %v3676_v29 }
 0x74e   : > { %v2198_v30 = vpop.xlane.xlu1 %2197 }
 0x74f   : > { %v2201_v48 = vmul.f32 %v2198_v30, %v5121_v37  ;;  %v4022_v30 = vld [vmem:[%s5085_s11 + $0x4c] sm:$0xf] }
 0x751   : > { %v5310_v49 = vsub.f32 %v5295_v26, %v2201_v48  ;;  %v3681_v48 = vld [vmem:[%s5085_s11 + $0x58] sm:$0xf0] }
 0x753   : > { %v2205_v50 = vmul.f32 %v5310_v49, %v5310_v49 }
 0x755   : > { %2207 = vadd.xlane.f32.xlu2 %v2205_v50  ;;  %v3744_v50 = vor.u32 %v4040_v47, %v3743_v43 }
 0x756   : > { %v2200_v51 = vpop.xlane.xlu0 %2199 }
 0x757   : > { %v2202_v52 = vmul.f32 %v2200_v51, %v5121_v37  ;;  %v3684_v51 = vor.u32 %v4022_v30, %v3681_v48  ;;  %2479 = vmatpush.bf16.msra.mxu2 %v3744_v50  ;;  %v4256_v30 = vld [vmem:[%s5569_s4] ss:$0 sm:$0xff] }
 0x759   : > { %v5316_v53 = vsub.f32 %v5299_v38, %v2202_v52  ;;  %v4017_v52 = vld [vmem:[%s5085_s11 + $0x24] sm:$0xf]  ;;  %2497 = vmatpush.bf16.msrb.mxu3 %v3684_v51 }
 0x75b   : > { %v2206_v54 = vmul.f32 %v5316_v53, %v5316_v53  ;;  %2480 = vmatpush.bf16.msra.mxu2 %v3728_v61  ;;  %v4056_v61 = vld [vmem:[%s5096_s24 + $0x58] sm:$0xff] }
 0x75d   : > { %2209 = vadd.xlane.f32.xlu1 %v2206_v54  ;;  %v3657_v54 = vld [vmem:[%s5085_s11 + $0x30] sm:$0xf0]  ;;  %2498 = vmatpush.bf16.msrb.mxu3 %v3668_v62  ;;  %s5568_s11 = scalar_lea.vmem [#allocation11], %s5029_s27  ;;  %v4049_v62 = vld [vmem:[%s5096_s24 + $0x20] sm:$0xff] }
 0x75e   : > { %v3660_v56 = vor.u32 %v4017_v52, %v3657_v54  ;;  %v4255_v45 = vld [vmem:[%s5568_s11] ss:$0 sm:$0xff]  ;;  %v4060_v52 = vld [vmem:[%s5096_s24 + $0x78] sm:$0xff] }
 0x75f   : > { %2481 = vmatpush.bf16.msra.mxu2 %v3712_v7  ;;  %v4076_v54 = vld [vmem:[%s5096_s24 + $0xf8] sm:$0xff]  ;;  %v4047_v7 = vld [vmem:[%s5096_s24 + $0x10] sm:$0xff] }
 0x760   : > { %2470 = vmatpush.bf16.msra.mxu1 %v3660_v56  ;;  %v4051_v56 = vld [vmem:[%s5096_s24 + $0x30] sm:$0xff] }
 0x761   : > { %2499 = vmatpush.bf16.msrb.mxu3 %v3652_v9  ;;  %2843 = vmatpush.bf16.msra.mxu0 %v4051_v56  ;;  %v4071_v9 = vld [vmem:[%s5096_s24 + $0xd0] sm:$0xff] }
 0x763   : > { %2482 = vmatpush.bf16.msra.mxu2 %v3696_v12 }
 0x764   : > { %2471 = vmatpush.bf16.msra.mxu1 %v3644_v6  ;;  %v2283_v6 = vperm.slane %v5401_v1, 1 }
 0x765   : > { %2884 = vmatpush.bf16.msra.mxu3 %v4076_v54  ;;  %2844 = vmatpush.bf16.msra.mxu0 %v4050_v59 }
 0x767   : > { %2483 = vmatpush.bf16.msra.mxu2 %v3680_v17  ;;  %v2282_v17 = vperm.slane %v5401_v1, 0 }
 0x768   : > { %2856 = vmatpush.bf16.msrb.mxu1 %v4060_v52 }
 0x769   : > { %2885 = vmatpush.bf16.msra.mxu3 %v4075_v57  ;;  %2845 = vmatpush.bf16.msra.mxu0 %v4049_v62  ;;  %v4062_v57 = vld [vmem:[%s5096_s24 + $0x88] sm:$0xff] }
 0x76b   : > { %2484 = vmatpush.bf16.msra.mxu2 %v3664_v24 }
 0x76f   : > { %2485 = vmatpush.bf16.msra.mxu2 %v3648_v32 }
 0x7c8   : > { %v2208_v60 = vpop.xlane.xlu2 %2207 }
 0x7c9   : > { %v2211_v2 = vmul.f32 %v2208_v60, %v5121_v37  ;;  %v4074_v60 = vld [vmem:[%s5096_s24 + $0xe8] sm:$0xff] }
 0x7ca   : > { %2886 = vmatpush.bf16.msra.mxu3 %v4074_v60  ;;  %v2284_v60 = vperm.slane %v5401_v1, 2 }
 0x7cb   : > { %v2213_v8 = vadd.f32 1e-06, %v2211_v2  ;;  %v4048_v2 = vld [vmem:[%s5096_s24 + $0x18] sm:$0xff] }
 0x7cc   : > { %2846 = vmatpush.bf16.msra.mxu0 %v4048_v2 }
 0x7cd   : > { %4296 = vrsqrt.f32 %v2213_v8  ;;  %vm2221_vm13 = vweird.f32 %v2213_v8 }
 0x7ce   : > { %2887 = vmatpush.bf16.msra.mxu3 %v4073_v63 }
 0x7d0   : > { %v2210_v13 = vpop.xlane.xlu1 %2209  ;;  %2847 = vmatpush.bf16.msra.mxu0 %v4047_v7 }
 0x7d1   : > { %v2212_v16 = vmul.f32 %v2210_v13, %v5121_v37  ;;  %v4046_v13 = vld [vmem:[%s5096_s24 + $0x8] sm:$0xff] }
 0x7d2   : > { %2888 = vmatpush.bf16.msra.mxu3 %v4072_v4 }
 0x7d3   : > { %v4297_v18 = vpop.eup %4296  ;;  %v2214_v19 = vadd.f32 1e-06, %v2212_v16 }
 0x7d4   : > { %v2216_v21 = vmul.f32 %v4297_v18, %v2213_v8  ;;  %vm2222_vm12 = vweird.f32 %v4297_v18  ;;  %v4067_v8 = vld [vmem:[%s5096_s24 + $0xb0] sm:$0xff]  ;;  %2848 = vmatpush.bf16.msra.mxu0 %v4046_v13 }
 0x7d5   : > { %4298 = vrsqrt.f32 %v2214_v19  ;;  %vm2223_vm14 = vmor %vm2221_vm13, %vm2222_vm12  ;;  %vm2231_vm0 = vweird.f32 %v2214_v19 }
 0x7d6   : > { %v2217_v22 = vmul.f32 %v4297_v18, %v2216_v21  ;;  %2889 = vmatpush.bf16.msra.mxu3 %v4071_v9  ;;  %v4065_v21 = vld [vmem:[%s5096_s24 + $0xa0] sm:$0xff] }
 0x7d8   : > { %v2218_v28 = vmul.f32 0.5, %v2217_v22  ;;  %v4069_v22 = vld [vmem:[%s5096_s24 + $0xc0] sm:$0xff]  ;;  %2849 = vmatpush.bf16.msra.mxu0 %v4045_v40 }
 0x7da   : > { %v2219_v31 = vsub.f32 1.5, %v2218_v28  ;;  %2890 = vmatpush.bf16.msra.mxu3 %v4070_v15 }
 0x7db   : > { %v4299_v33 = vpop.eup %4298 }
 0x7dc   : > { %v2220_v34 = vmul.f32 %v4297_v18, %v2219_v31  ;;  %v2226_v23 = vmul.f32 %v4299_v33, %v2214_v19  ;;  %vm2232_vm15 = vweird.f32 %v4299_v33 }
 0x7dd   : > { %vm2233_vm1 = vmor %vm2231_vm0, %vm2232_vm15 }
 0x7de   : > { %v2227_v35 = vmul.f32 %v4299_v33, %v2226_v23  ;;  %v2224_v39 = vsel %vm2223_vm14, %v4297_v18, %v2220_v34  ;;  %v2285_v18 = vperm.slane %v5401_v1, 3  ;;  %2891 = vmatpush.bf16.msra.mxu3 %v4069_v22 }
 0x7df   : > { %v2235_v42 = vmul.f32 %v2224_v39, %v5310_v49 }
 0x7e0   : > { %v2228_v27 = vmul.f32 0.5, %v2227_v35  ;;  %v4064_v35 = vld [vmem:[%s5096_s24 + $0x98] sm:$0xff] }
 0x7e1   : > { %v2240_v47 = vmul.f32 %v4255_v45, %v2235_v42 }
 0x7e2   : > { %v2229_v41 = vsub.f32 1.5, %v2228_v27 }
 0x7e3   : > { %v2245_v50 = vadd.f32 %v4256_v30, %v2240_v47 }
 0x7e4   : > { %v2230_v46 = vmul.f32 %v4299_v33, %v2229_v41 }
 0x7e6   : > { %v2234_v43 = vsel %vm2233_vm1, %v4299_v33, %v2230_v46 }
 0x7e7   : > { %v2236_v29 = vmul.f32 %v2234_v43, %v5316_v53  ;;  %v4059_v53 = vld [vmem:[%s5096_s24 + $0x70] sm:$0xff] }
 0x7e8   : > { %2857 = vmatpush.bf16.msrb.mxu1 %v4059_v53 }
 0x7e9   : > { %v2241_v48 = vmul.f32 %v4255_v45, %v2236_v29  ;;  %v4063_v29 = vld [vmem:[%s5096_s24 + $0x90] sm:$0xff] }
 0x7eb   : > { %v2246_v49 = vadd.f32 %v4256_v30, %v2241_v48 }
 0x7ec   : > { %2858 = vmatpush.bf16.msrb.mxu1 %v4058_v55 }
 0x7ed   : > { %v2247_v51 = vpack.c.bf16 %v2246_v49, %v2245_v50 }
 0x7ef   : > { %2458 = vmatmul.bf16.vlgmr.msrb.gmra.mxu2 %v2247_v51  ;;  %2472 = vmatmul.bf16.vlgmr.msra.gmra.mxu1 %v2247_v51 }
 0x7f0   : > { %2500 = vmatmul.bf16.vlgmr.msrb.gmra.mxu3 %v2247_v51  ;;  %2859 = vmatpush.bf16.msrb.mxu1 %v4057_v58 }
 0x7f1   : > { %2870 = vmatpush.bf16.msrb.mxu2 %v4068_v3  ;;  %v4061_v3 = vld [vmem:[%s5096_s24 + $0x80] sm:$0xff]  ;;  %s5571_s24 = sld [smem:[#allocation46_spill]] (!%p3893_p1) }
 0x7f4   : > { %2860 = vmatpush.bf16.msrb.mxu1 %v4056_v61 }
 0x7f5   : > { %2871 = vmatpush.bf16.msrb.mxu2 %v4067_v8 }
 0x7f8   : > { %2861 = vmatpush.bf16.msrb.mxu1 %v4055_v0 }
 0x7f9   : > { %2872 = vmatpush.bf16.msrb.mxu2 %v4066_v14 }
 0x7fc   : > { %2862 = vmatpush.bf16.msrb.mxu1 %v4054_v5 }
 0x7fd   : > { %2873 = vmatpush.bf16.msrb.mxu2 %v4065_v21 }
 0x7ff   : > { %2486 = vmatmul.bf16.vlgmr.msra.gmra.mxu2 %v2247_v51 }
 0x800   : > { %2863 = vmatpush.bf16.msrb.mxu1 %v4053_v11 }
 0x801   : > { %2874 = vmatpush.bf16.msrb.mxu2 %v4064_v35 }
 0x805   : > { %2875 = vmatpush.bf16.msrb.mxu2 %v4063_v29 }
 0x809   : > { %2876 = vmatpush.bf16.msrb.mxu2 %v4062_v57 }
 0x80d   : > { %2877 = vmatpush.bf16.msrb.mxu2 %v4061_v3 }
 0x86c   : > { %v2473_v10 = vpop.f32.mrf.mxu1 }
 0x86d   : > { %v5412_v12 = vadd.f32 %v2473_v10, %v2283_v6 }
 0x86f   : > { %v2507_v16 = vmul.f32 %v5412_v12, %v5412_v12 }
 0x871   : > { %v2515_v19 = vmul.f32 %v2507_v16, %v5412_v12 }
 0x872   : > { %v2459_v20 = vpop.f32.mrf.mxu2 }
 0x873   : > { %v2523_v24 = vmul.f32 0.044715, %v2515_v19  ;;  %v5425_v25 = vadd.f32 %v2459_v20, %v2282_v17  ;;  %v2501_v44 = vpop.f32.mrf.mxu3 }
 0x874   : > { %v5427_v28 = vadd.f32 %v2501_v44, %v2285_v18  ;;  %v2475_v31 = vpop.f32.mrf.mxu1 }
 0x875   : > { %v2531_v32 = vadd.f32 %v2523_v24, %v5412_v12  ;;  %v2506_v33 = vmul.f32 %v5425_v25, %v5425_v25  ;;  %v5432_v34 = vadd.f32 %v2475_v31, %v2283_v6 }
 0x876   : > { %v2509_v23 = vmul.f32 %v5427_v28, %v5427_v28 }
 0x877   : > { %v2539_v36 = vmul.f32 0.7978846, %v2531_v32  ;;  %v2514_v39 = vmul.f32 %v2506_v33, %v5425_v25  ;;  %v2511_v27 = vmul.f32 %v5432_v34, %v5432_v34 }
 0x878   : > { %v2517_v41 = vmul.f32 %v2509_v23, %v5427_v28 }
 0x879   : > { %v2522_v42 = vmul.f32 0.044715, %v2514_v39  ;;  %v2519_v45 = vmul.f32 %v2511_v27, %v5432_v34  ;;  %4300 = vtanh.f32 %v2539_v36 }
 0x87a   : > { %v2525_v46 = vmul.f32 0.044715, %v2517_v41  ;;  %v2461_v43 = vpop.f32.mrf.mxu2 }
 0x87b   : > { %v2530_v47 = vadd.f32 %v2522_v42, %v5425_v25  ;;  %v2527_v30 = vmul.f32 0.044715, %v2519_v45  ;;  %v5444_v48 = vadd.f32 %v2461_v43, %v2282_v17  ;;  %v2503_v50 = vpop.f32.mrf.mxu3 }
 0x87c   : > { %v2533_v49 = vadd.f32 %v2525_v46, %v5427_v28  ;;  %v5447_v51 = vadd.f32 %v2503_v50, %v2285_v18 }
 0x87d   : > { %v2538_v52 = vmul.f32 0.7978846, %v2530_v47  ;;  %v2535_v53 = vadd.f32 %v2527_v30, %v5432_v34  ;;  %v2510_v54 = vmul.f32 %v5444_v48, %v5444_v48 }
 0x87e   : > { %v2541_v55 = vmul.f32 0.7978846, %v2533_v49  ;;  %v2513_v56 = vmul.f32 %v5447_v51, %v5447_v51 }
 0x87f   : > { %v2543_v58 = vmul.f32 0.7978846, %v2535_v53  ;;  %v2518_v59 = vmul.f32 %v2510_v54, %v5444_v48  ;;  %4302 = vtanh.f32 %v2538_v52  ;;  %v4301_v62 = vpop.eup %4300 }
 0x880   : > { %v2521_v61 = vmul.f32 %v2513_v56, %v5447_v51  ;;  %v2555_v6 = vadd.f32 1.0, %v4301_v62 }
 0x881   : > { %4304 = vtanh.f32 %v2543_v58  ;;  %v2526_v63 = vmul.f32 0.044715, %v2518_v59 }
 0x882   : > { %4306 = vtanh.f32 %v2541_v55  ;;  %v2529_v0 = vmul.f32 0.044715, %v2521_v61  ;;  %v2487_v2 = vpop.f32.mrf.mxu2  ;;  %v2563_v15 = vmul.f32 0.5, %v2555_v6 }
 0x883   : > { %v2534_v4 = vadd.f32 %v2526_v63, %v5444_v48  ;;  %v2488_v5 = vadd.f32 %v2487_v2, %v2284_v60 }
 0x884   : > { %v2537_v7 = vadd.f32 %v2529_v0, %v5447_v51  ;;  %v2571_v24 = vmul.f32 %v2563_v15, %v5412_v12 }
 0x885   : > { %v2542_v8 = vmul.f32 0.7978846, %v2534_v4  ;;  %v2508_v1 = vmul.f32 %v2488_v5, %v2488_v5  ;;  %v4303_v9 = vpop.eup %4302 }
 0x886   : > { %v2545_v10 = vmul.f32 0.7978846, %v2537_v7  ;;  %v2554_v18 = vadd.f32 1.0, %v4303_v9 }
 0x887   : > { %v4305_v11 = vpop.eup %4304  ;;  %4308 = vtanh.f32 %v2542_v8  ;;  %v2516_v13 = vmul.f32 %v2508_v1, %v2488_v5 }
 0x888   : > { %v4307_v14 = vpop.eup %4306  ;;  %v2559_v16 = vadd.f32 1.0, %v4305_v11  ;;  %4310 = vtanh.f32 %v2545_v10  ;;  %v2562_v35 = vmul.f32 0.5, %v2554_v18 }
 0x889   : > { %v2524_v17 = vmul.f32 0.044715, %v2516_v13  ;;  %v2557_v40 = vadd.f32 1.0, %v4307_v14 }
 0x88a   : > { %v2567_v19 = vmul.f32 0.5, %v2559_v16  ;;  %v2489_v20 = vpop.f32.mrf.mxu2  ;;  %v2570_v29 = vmul.f32 %v2562_v35, %v5425_v25 }
 0x88b   : > { %v2532_v21 = vadd.f32 %v2524_v17, %v2488_v5  ;;  %v2490_v22 = vadd.f32 %v2489_v20, %v2284_v60  ;;  %v2565_v27 = vmul.f32 0.5, %v2557_v40 }
 0x88c   : > { %v2575_v44 = vmul.f32 %v2567_v19, %v5432_v34 }
 0x88d   : > { %v4309_v31 = vpop.eup %4308  ;;  %v2540_v32 = vmul.f32 0.7978846, %v2532_v21  ;;  %v2512_v33 = vmul.f32 %v2490_v22, %v2490_v22  ;;  %v2573_v34 = vmul.f32 %v2565_v27, %v5427_v28 }
 0x88e   : > { %v4311_v23 = vpop.eup %4310  ;;  %v2558_v36 = vadd.f32 1.0, %v4309_v31  ;;  %v2579_v39 = vpack.c.bf16 %v2575_v44, %v2571_v24 }
 0x88f   : > { %v2561_v41 = vadd.f32 1.0, %v4311_v23  ;;  %v2520_v42 = vmul.f32 %v2512_v33, %v2490_v22  ;;  %4312 = vtanh.f32 %v2540_v32 }
 0x890   : > { %v2566_v45 = vmul.f32 0.5, %v2558_v36  ;;  %2864 = vmatmul.bf16.vlgmr.msrb.gmra.mxu1 %v2579_v39 }
 0x891   : > { %v2569_v46 = vmul.f32 0.5, %v2561_v41  ;;  %v2528_v43 = vmul.f32 0.044715, %v2520_v42 }
 0x892   : > { %v2574_v12 = vmul.f32 %v2566_v45, %v5444_v48 }
 0x893   : > { %v2577_v47 = vmul.f32 %v2569_v46, %v5447_v51  ;;  %v2536_v30 = vadd.f32 %v2528_v43, %v2490_v22  ;;  %v4257_v51 = vld [vmem:[%s5570_s2] ss:$0 sm:$0xff] }
 0x894   : > { %v2578_v50 = vpack.c.bf16 %v2574_v12, %v2570_v29 }
 0x895   : > { %v2544_v49 = vmul.f32 0.7978846, %v2536_v30  ;;  %v2581_v52 = vpack.c.bf16 %v2577_v47, %v2573_v34  ;;  %v4313_v53 = vpop.eup %4312 }
 0x896   : > { %2850 = vmatmul.bf16.vlgmr.msra.gmra.mxu0 %v2578_v50  ;;  %v2556_v54 = vadd.f32 1.0, %v4313_v53 }
 0x897   : > { %4314 = vtanh.f32 %v2544_v49  ;;  %2892 = vmatmul.bf16.vlgmr.msra.gmra.mxu3 %v2581_v52 }
 0x898   : > { %v2564_v56 = vmul.f32 0.5, %v2556_v54 }
 0x89a   : > { %v2572_v58 = vmul.f32 %v2564_v56, %v2488_v5 }
 0x89d   : > { %v4315_v55 = vpop.eup %4314 }
 0x89e   : > { %v2560_v57 = vadd.f32 1.0, %v4315_v55 }
 0x8a0   : > { %v2568_v25 = vmul.f32 0.5, %v2560_v57 }
 0x8a2   : > { %v2576_v48 = vmul.f32 %v2568_v25, %v2490_v22 }
 0x8a4   : > { %v2580_v59 = vpack.c.bf16 %v2576_v48, %v2572_v58 }
 0x8a6   : > { %2878 = vmatmul.bf16.vlgmr.msrb.gmra.mxu2 %v2580_v59 }
 0x90d   : > { %v2865_v61 = vpop.f32.mrf.mxu1 }
 0x913   : > { %v2851_v28 = vpop.f32.mrf.mxu0 }
 0x914   : > { %v2852_v60 = vadd.f32 %v4257_v51, %v2851_v28 }
 0x915   : > { %v2867_v8 = vpop.f32.mrf.mxu1 }
 0x916   : > { %v2866_v63 = vadd.f32 %v2865_v61, %v2852_v60 }
 0x91a   : > { %v2893_v62 = vpop.f32.mrf.mxu3 }
 0x91b   : > { %v2853_v0 = vpop.f32.mrf.mxu0 }
 0x91c   : > { %v2854_v4 = vadd.f32 %v4257_v51, %v2853_v0 }
 0x91e   : > { %v2868_v5 = vadd.f32 %v2867_v8, %v2854_v4 }
 0x922   : > { %v2895_v10 = vpop.f32.mrf.mxu3 }
 0x929   : > { %v2879_v2 = vpop.f32.mrf.mxu2 }
 0x92a   : > { %v2880_v3 = vadd.f32 %v2879_v2, %v2866_v63 }
 0x92c   : > { %v2894_v6 = vadd.f32 %v2893_v62, %v2880_v3 }
 0x92e   : > { %v2898_v7 = vadd.f32 %v2894_v6, %v5295_v26 }
 0x930   : > { %2900 = vst [vmem:[#allocation2] sm:$0xff] %v2898_v7 }
 0x931   : > { %v2881_v1 = vpop.f32.mrf.mxu2 }
 0x932   : > { %v2882_v9 = vadd.f32 %v2881_v1, %v2868_v5 }
 0x934   : > { %v2896_v11 = vadd.f32 %v2895_v10, %v2882_v9  ;;  %2905 = sbr.rel (%p3893_p1) target bundleno = 2768 (0xad0), region = 156 }
 0x936   : > { %v2899_v13 = vadd.f32 %v2896_v11, %v5299_v38 }
 0x938   : > { %2901 = vst [vmem:[#allocation2 + $0x8] sm:$0xff] %v2899_v13 }
 0x939   : > { %v2907_v14 = vrot.slane %v2899_v13, 7  ;;  %vm2909_vm2 = vcmask 1040384   ;;  %vm2913_vm3 = vcmask 1041408   ;;  %v4084_v26 = vld [vmem:[#allocation17 + $0x38] sm:$0xff]  ;;  %v4083_v38 = vld [vmem:[#allocation17 + $0x30] sm:$0xff]  ;;  %v4082_v21 = vld [vmem:[#allocation17 + $0x28] sm:$0xff] }
 0x93a   : > { %3013 = vmatpush.bf16.msra.mxu0 %v4084_v26  ;;  %v4081_v22 = vld [vmem:[#allocation17 + $0x20] sm:$0xff]  ;;  %v4080_v24 = vld [vmem:[#allocation17 + $0x18] sm:$0xff]  ;;  %v4079_v44 = vld [vmem:[#allocation17 + $0x10] sm:$0xff] }
 0x93b   : > { %v2910_v15 = vsel %vm2909_vm2, %v2898_v7, %v2907_v14  ;;  %v4078_v31 = vld [vmem:[#allocation17 + $0x8] sm:$0xff]  ;;  %v4077_v32 = vld [vmem:[#allocation17] sm:$0xff]  ;;  %v4317_v12 = vld [vmem:[#allocation15] ss:$0 sm:$0xff] }
 0x93c   : > { %v2914_v16 = vsel %vm2913_vm3, %v2910_v15, 0.0  ;;  %v4316_v46 = vld [vmem:[%s5571_s24] ss:$0 sm:$0xff]  ;;  %v4318_v30 = vld [vmem:[#allocation18] ss:$0 sm:$0xff] }
 0x93d   : > { %2915 = vadd.xlane.f32.xlu0 %v2914_v16 }
 0x93e   : > { %3014 = vmatpush.bf16.msra.mxu0 %v4083_v38 }
 0x942   : > { %3015 = vmatpush.bf16.msra.mxu0 %v4082_v21 }
 0x946   : > { %3016 = vmatpush.bf16.msra.mxu0 %v4081_v22 }
 0x94a   : > { %3017 = vmatpush.bf16.msra.mxu0 %v4080_v24 }
 0x94e   : > { %3018 = vmatpush.bf16.msra.mxu0 %v4079_v44 }
 0x952   : > { %3019 = vmatpush.bf16.msra.mxu0 %v4078_v31 }
 0x956   : > { %3020 = vmatpush.bf16.msra.mxu0 %v4077_v32 }
 0x9b0   : > { %v2916_v17 = vpop.xlane.xlu0 %2915 }
 0x9b1   : > { %v2917_v18 = vmul.f32 %v2916_v17, %v5121_v37 }
 0x9b3   : > { %v2918_v19 = vsub.f32 %v2910_v15, %v2917_v18 }
 0x9b5   : > { %v2919_v20 = vmul.f32 %v2918_v19, %v2918_v19 }
 0x9b7   : > { %v2920_v40 = vsel %vm2913_vm3, %v2919_v20, 0.0 }
 0x9b8   : > { %2921 = vadd.xlane.f32.xlu0 %v2920_v40 }
 0xa2b   : > { %v2922_v33 = vpop.xlane.xlu0 %2921 }
 0xa2c   : > { %v2923_v23 = vmul.f32 %v2922_v33, %v5121_v37 }
 0xa2e   : > { %v2924_v35 = vadd.f32 1e-06, %v2923_v23 }
 0xa30   : > { %4319 = vrsqrt.f32 %v2924_v35  ;;  %vm2931_vm5 = vweird.f32 %v2924_v35 }
 0xa36   : > { %v4320_v36 = vpop.eup %4319 }
 0xa37   : > { %v2926_v39 = vmul.f32 %v4320_v36, %v2924_v35  ;;  %vm2932_vm4 = vweird.f32 %v4320_v36 }
 0xa38   : > { %vm2933_vm6 = vmor %vm2931_vm5, %vm2932_vm4 }
 0xa39   : > { %v2927_v27 = vmul.f32 %v4320_v36, %v2926_v39 }
 0xa3b   : > { %v2928_v41 = vmul.f32 0.5, %v2927_v27 }
 0xa3d   : > { %v2929_v42 = vsub.f32 1.5, %v2928_v41 }
 0xa3f   : > { %v2930_v45 = vmul.f32 %v4320_v36, %v2929_v42 }
 0xa41   : > { %v2934_v43 = vsel %vm2933_vm6, %v4320_v36, %v2930_v45 }
 0xa42   : > { %v2935_v29 = vmul.f32 %v2934_v43, %v2918_v19 }
 0xa44   : > { %v2939_v34 = vmul.f32 %v4316_v46, %v2935_v29 }
 0xa46   : > { %v2943_v37 = vadd.f32 %v4317_v12, %v2939_v34 }
 0xa48   : > { %v2944_v47 = vpack.c.bf16 %v2943_v37, %v2943_v37 }
 0xa4a   : > { %3021 = vmatmul.bf16.vlgmr.msra.gmra.mxu0 %v2944_v47 }
 0xac7   : > { %v3022_v50 = vpop.f32.mrf.mxu0 }
 0xac8   : > { %v3023_v49 = vadd.f32 %v4318_v30, %v3022_v50 }
 0xaca   : > { %3026 = vst [vmem:[#allocation20] sm:$0x3] %v3023_v49 }
 0xacf   : > { %v3024_v52 = vpop.f32.mrf.mxu0 }
 0xad0 PF: > { %p4170_p3 = scmp.eq.s32.totalorder %s4865_s5, 1  ;;  %s4725_s25 = smov [#allocation20]  }
 0xad1   : > { %s3033_s8 = sshll.u32 %s4725_s25, 4  ;;  %s5572_s3 = sld [smem:[#allocation48_spill]]  ;;  %s3034_s8 = int_to_ptr.vmem [resolvable:$true] %s3033_s8 }
 0xad7   : > { %s3035_s18 = sshll.u32 %s5572_s3, 4  ;;  %s3036_s18 = int_to_ptr.hbm [resolvable:$true] %s3035_s18 }
 0xad8   : > { %4122 = dma.vmem_to_hbm [thread:$0]  (%p4170_p3), %s3034_s8, 32, %s3036_s18, [#allocation5]  }
 0xad9   : > { %4690 = dma.done.wait (%p4170_p3), [#allocation5], 32  }
 0xada   : > { %4692 = vsyncadd (%p4170_p3), [#allocation5], 4294967264 }
 0xadb PF: > { %s5573_s30 = sld [smem:[#allocation29_spill]]  ;;  %s5576_s3 = smov %s4699_s28 }
 0xadc   : > { %s5574_s26 = sld [smem:[#allocation28_spill]] }
 0xadd   : > { %s5575_s29 = sld [smem:[#allocation30_spill]] }
 0xae1   : > { %p40_p13 = scmp.ge.s32.totalorder %s5573_s30, 4  }
 0xae2   : > { %s5577_s28 = smov %s5574_s26 }
 0xae3   :  { %42 = sbr.rel (!%p40_p13) target bundleno = 29 (0x1d), region = 237 }
 0xae8   :  { %3049 = vsyncpa [#allocation4], 1 }
 0xae9   :  { %3051 = vsyncpa [#allocation4 + $0x1], 1 }
 0xaea   :  { %3052 = vsyncpa [#allocation7], 1 }
 0xaeb   :  { %3053 = vsyncpa [#allocation10], 1 }
 0xaec   :  { %3055 = vsyncpa [#allocation10 + $0x1], 1 }
 0xaed   :  { %3056 = vsyncpa [#allocation13], 1 }
 0xaee   :  { %3058 = vsyncpa [#allocation13 + $0x1], 1 }
 0xaef   :  { %3059 = vsyncpa [#allocation16], 1 }
 0xaf0   :  { %3060 = vsyncpa [#allocation19], 1 }
 0xaf1   :  { %3061 = vsyncpa [#allocation5], 1 }
 0xaf2   :  { %3063 = vsyncpa [#allocation5 + $0x1], 1 }

</bundles_post_ra>
